<compile_context>
chip_gen: v7x
topology: tpu7x:2x2x1
jax: 0.10.0
libtpu: 0.0.40
codegen_flags: <defaults>
</compile_context>

<pallas_src>
import jax
import jax.numpy as jnp
from jax.experimental import pallas as pl
from jax.experimental.pallas import tpu as pltpu

EPS = 1e-5


def _bn_kernel(x_ref, gamma_ref, beta_ref, o_ref):
    # x_ref / o_ref: (N, tc, HW) float32 tile of the (N, C, HW) slab.
    # gamma_ref / beta_ref: (C, 1) float32, resident across all grid steps.
    i = pl.program_id(0)
    n, tc, hw = x_ref.shape
    inv_l = 1.0 / float(n * hw)

    # Pass 1: per-channel mean (streamed from VMEM; nothing kept live).
    s1 = jnp.sum(x_ref[...], axis=(0, 2), keepdims=True)       # (1, tc, 1)
    mean = s1 * inv_l

    # Pass 2: centered (biased) variance -- numerically safer than E[x^2]-E[x]^2.
    d = x_ref[...] - mean
    var = jnp.sum(d * d, axis=(0, 2), keepdims=True) * inv_l    # (1, tc, 1)
    inv_std = jax.lax.rsqrt(var + EPS)                          # EUP, ~free

    # Per-tile affine scalars from the resident (C, 1) parameter blocks.
    g = gamma_ref[pl.ds(i * tc, tc), :].reshape(1, tc, 1)
    bt = beta_ref[pl.ds(i * tc, tc), :].reshape(1, tc, 1)
    a = g * inv_std                                             # (1, tc, 1)
    b = bt - mean * a                                           # (1, tc, 1)

    # Pass 3: fused affine, one mul + one add per element (fresh VMEM read).
    o_ref[...] = (x_ref[...] * a + b).astype(o_ref.dtype)


def batchnorm2d_pallas(x_nchw, gamma, beta):
    """BatchNorm2d forward (training-mode batch statistics) via a Pallas kernel.

    x_nchw: (N, C, H, W) float32
    gamma, beta: (C,) float32
    returns: (N, C, H, W) float32
    """
    N, C, H, W = x_nchw.shape
    HW = H * W

    # Free reshape (no transpose) for any batch size: channels on sublanes,
    # spatial on lanes.
    x3 = x_nchw.reshape(N, C, HW).astype(jnp.float32)
    g2 = gamma.reshape(C, 1).astype(jnp.float32)
    b2 = beta.reshape(C, 1).astype(jnp.float32)

    # Channel tile: split into exactly 2 steps when possible (balanced across
    # the 2 TCs on v7x, minimal per-step overhead on v5e/v6e); otherwise one
    # full-channel step.  Tile bytes (~N*tc*HW*4) are far below VMEM limits.
    if C % 2 == 0 and (C // 2) % 8 == 0:
        tc = C // 2
    else:
        tc = C
    grid = (C // tc,)

    cost = pl.CostEstimate(
        flops=5 * N * C * HW,            # sum, center, square, mul, add (approx)
        transcendentals=C,               # rsqrt per channel
        bytes_accessed=2 * N * C * HW * 4 + 2 * C * 4,
    )

    out3 = pl.pallas_call(
        _bn_kernel,
        out_shape=jax.ShapeDtypeStruct((N, C, HW), jnp.float32),
        grid=grid,
        in_specs=[
            pl.BlockSpec((N, tc, HW), lambda i: (0, i, 0)),
            pl.BlockSpec((C, 1), lambda i: (0, 0)),   # resident: DMA'd once
            pl.BlockSpec((C, 1), lambda i: (0, 0)),   # resident: DMA'd once
        ],
        out_specs=pl.BlockSpec((N, tc, HW), lambda i: (0, i, 0)),
        compiler_params=pltpu.CompilerParams(
            dimension_semantics=("parallel",),
        ),
        cost_estimate=cost,
    )(x3, g2, b2)

    return out3.reshape(N, C, H, W)


def _reference_bn(x_nchw, gamma, beta):
    mean = jnp.mean(x_nchw, axis=(0, 2, 3), keepdims=True)
    var = jnp.mean((x_nchw - mean) ** 2, axis=(0, 2, 3), keepdims=True)
    g = gamma.reshape(1, -1, 1, 1)
    b = beta.reshape(1, -1, 1, 1)
    return (x_nchw - mean) * jax.lax.rsqrt(var + EPS) * g + b


if __name__ == "__main__":
    key = jax.random.PRNGKey(0)
    kx, kg, kb = jax.random.split(key, 3)

    # Shapes implied by the module: BatchNorm2d(192) on a (1, 192, 28, 28) input.
    N, C, H, W = 1, 192, 28, 28
    x = jax.random.normal(kx, (N, C, H, W), dtype=jnp.float32)

    # Deterministic non-trivial affine parameters.
    gamma = 1.0 + 0.1 * jax.random.normal(kg, (C,), dtype=jnp.float32)
    beta = 0.1 * jax.random.normal(kb, (C,), dtype=jnp.float32)

    out = batchnorm2d_pallas(x, gamma, beta)
    out = jax.block_until_ready(out)

    ref = _reference_bn(x, gamma, beta)
    assert out.shape == (N, C, H, W)
    assert jnp.allclose(out, ref, atol=1e-4, rtol=1e-4), "mismatch vs reference"

    print("KERNEL_OK")
</pallas_src>

<mosaic_0001>
module attributes {stable_mosaic.version = 11 : i64} {
  func.func @_bn_kernel(%arg0: i32, %arg1: memref<1x96x784xf32, #tpu.memory_space<vmem>>, %arg2: memref<192x1xf32, #tpu.memory_space<vmem>>, %arg3: memref<192x1xf32, #tpu.memory_space<vmem>>, %arg4: memref<1x96x784xf32, #tpu.memory_space<vmem>>) attributes {dimension_semantics = [#tpu.dimension_semantics<parallel>], iteration_bounds = array<i64: 2>, scalar_prefetch = 0 : i64, scratch_operands = 0 : i64, tpu.core_type = #tpu.core_type<tc>, window_params = [{transform_indices = @transform_0, window_bounds = array<i64: 1, 96, 784>}, {pipeline_mode = #tpu.pipeline_mode<synchronous>, transform_indices = @transform_1, window_bounds = array<i64: 192, 1>}, {pipeline_mode = #tpu.pipeline_mode<synchronous>, transform_indices = @transform_2, window_bounds = array<i64: 192, 1>}, {transform_indices = @transform_3, window_bounds = array<i64: 1, 96, 784>}]} {
    %c0 = arith.constant 0 : index
    %c0_0 = arith.constant 0 : index
    %c0_1 = arith.constant 0 : index
    %0 = vector.load %arg1[%c0, %c0_0, %c0_1] : memref<1x96x784xf32, #tpu.memory_space<vmem>>, vector<1x96x784xf32>
    %cst = arith.constant dense<0.000000e+00> : vector<96xf32>
    %1 = vector.multi_reduction <add>, %0, %cst [0, 2] : vector<1x96x784xf32> to vector<96xf32>
    %2 = vector.shape_cast %1 : vector<96xf32> to vector<1x96x1xf32>
    %cst_2 = arith.constant 0.00127551018 : f32
    %3 = vector.broadcast %cst_2 : f32 to vector<1x96x1xf32>
    %4 = arith.mulf %2, %3 : vector<1x96x1xf32>
    %c0_3 = arith.constant 0 : index
    %c0_4 = arith.constant 0 : index
    %c0_5 = arith.constant 0 : index
    %5 = vector.load %arg1[%c0_3, %c0_4, %c0_5] : memref<1x96x784xf32, #tpu.memory_space<vmem>>, vector<1x96x784xf32>
    %6 = vector.broadcast %4 : vector<1x96x1xf32> to vector<1x96x784xf32>
    %7 = arith.subf %5, %6 : vector<1x96x784xf32>
    %8 = arith.mulf %7, %7 : vector<1x96x784xf32>
    %cst_6 = arith.constant dense<0.000000e+00> : vector<96xf32>
    %9 = vector.multi_reduction <add>, %8, %cst_6 [0, 2] : vector<1x96x784xf32> to vector<96xf32>
    %10 = vector.shape_cast %9 : vector<96xf32> to vector<1x96x1xf32>
    %cst_7 = arith.constant 0.00127551018 : f32
    %11 = vector.broadcast %cst_7 : f32 to vector<1x96x1xf32>
    %12 = arith.mulf %10, %11 : vector<1x96x1xf32>
    %cst_8 = arith.constant 9.99999974E-6 : f32
    %13 = vector.broadcast %cst_8 : f32 to vector<1x96x1xf32>
    %14 = arith.addf %12, %13 : vector<1x96x1xf32>
    %15 = math.rsqrt %14 : vector<1x96x1xf32>
    %c96_i32 = arith.constant 96 : i32
    %16 = arith.muli %arg0, %c96_i32 : i32
    %17 = arith.index_cast %16 : i32 to index
    %c0_9 = arith.constant 0 : index
    %18 = vector.load %arg2[%17, %c0_9] : memref<192x1xf32, #tpu.memory_space<vmem>>, vector<96x1xf32>
    %19 = vector.shape_cast %18 : vector<96x1xf32> to vector<1x96x1xf32>
    %c96_i32_10 = arith.constant 96 : i32
    %20 = arith.muli %arg0, %c96_i32_10 : i32
    %21 = arith.index_cast %20 : i32 to index
    %c0_11 = arith.constant 0 : index
    %22 = vector.load %arg3[%21, %c0_11] : memref<192x1xf32, #tpu.memory_space<vmem>>, vector<96x1xf32>
    %23 = vector.shape_cast %22 : vector<96x1xf32> to vector<1x96x1xf32>
    %24 = arith.mulf %19, %15 : vector<1x96x1xf32>
    %25 = arith.mulf %4, %24 : vector<1x96x1xf32>
    %26 = arith.subf %23, %25 : vector<1x96x1xf32>
    %c0_12 = arith.constant 0 : index
    %c0_13 = arith.constant 0 : index
    %c0_14 = arith.constant 0 : index
    %27 = vector.load %arg1[%c0_12, %c0_13, %c0_14] : memref<1x96x784xf32, #tpu.memory_space<vmem>>, vector<1x96x784xf32>
    %28 = vector.broadcast %24 : vector<1x96x1xf32> to vector<1x96x784xf32>
    %29 = arith.mulf %27, %28 : vector<1x96x784xf32>
    %30 = vector.broadcast %26 : vector<1x96x1xf32> to vector<1x96x784xf32>
    %31 = arith.addf %29, %30 : vector<1x96x784xf32>
    %c0_15 = arith.constant 0 : index
    %c0_16 = arith.constant 0 : index
    %c0_17 = arith.constant 0 : index
    %32 = vector.load %arg4[%c0_15, %c0_16, %c0_17] : memref<1x96x784xf32, #tpu.memory_space<vmem>>, vector<1x96x784xf32>
    tpu.vector_store %arg4[%c0_15, %c0_16, %c0_17], %31 {strides = array<i32>} : memref<1x96x784xf32, #tpu.memory_space<vmem>>, vector<1x96x784xf32>,
    return
  }
  func.func @transform_0(%arg0: i32) -> (i32, i32, i32) {
    %c0_i32 = arith.constant 0 : i32
    %c0_i32_0 = arith.constant 0 : i32
    %c0_i32_1 = arith.constant 0 : i32
    return %c0_i32, %arg0, %c0_i32_0 : i32, i32, i32
  }
  func.func @transform_1(%arg0: i32) -> (i32, i32) {
    %c0_i32 = arith.constant 0 : i32
    %c0_i32_0 = arith.constant 0 : i32
    %c0_i32_1 = arith.constant 0 : i32
    return %c0_i32, %c0_i32_0 : i32, i32
  }
  func.func @transform_2(%arg0: i32) -> (i32, i32) {
    %c0_i32 = arith.constant 0 : i32
    %c0_i32_0 = arith.constant 0 : i32
    %c0_i32_1 = arith.constant 0 : i32
    return %c0_i32, %c0_i32_0 : i32, i32
  }
  func.func @transform_3(%arg0: i32) -> (i32, i32, i32) {
    %c0_i32 = arith.constant 0 : i32
    %c0_i32_0 = arith.constant 0 : i32
    %c0_i32_1 = arith.constant 0 : i32
    return %c0_i32, %arg0, %c0_i32_0 : i32, i32, i32
  }
}

</mosaic_0001>

<bundles_post_ra>
// kernel: tpu_custom_call.1
= control target key start
LH: loop header
LB: loop body
LE: loop exit
PB: predicated region body
PF: predicated region fallthrough
CT: control target
= control target key end

     0   :  { %8 = vsyncpa [#allocation3], 0  ;;  %s2807_s0 = inlined_call_operand.hbm [shape: f32[1,192,784], index: 0, kind: input, shape index: {}]   ;;  %s2808_s1 = inlined_call_operand.vmem [shape: f32[192,1], index: 1, kind: input, shape index: {}]   ;;  %s2809_s2 = inlined_call_operand.vmem [shape: f32[192,1], index: 2, kind: input, shape index: {}]   ;;  %s2810_s3 = inlined_call_operand.hbm [shape: f32[1,192,784], index: 3, kind: output, shape index: {}]  }
   0x1   :  { %10 = vsyncpa [#allocation3 + $0x1], 0 }
   0x2   :  { %11 = vsyncpa [#allocation4], 0 }
   0x3   :  { %13 = vsyncpa [#allocation4 + $0x1], 0  ;;  %s1536_s12 = smov 0   ;;  %s1538_s13 = smov 0  }
   0x4   :  { %s1540_s14 = smov 0   ;;  %s1542_s15 = smov 0  }
   0x5 LB: > { %s1557_s16 = sadd.s32 4294967295, %s1507_s15   ;;  %s1236_s17 = sadd.s32 4294967294, %s1507_s15   ;;  %s1507_s15 = sphi %s1542_s15, %s2973_s15   ;;  %s1503_s14 = sphi %s1540_s14, %s2972_s14   ;;  %s1499_s13 = sphi %s1538_s13, %s2971_s13   ;;  %s1495_s12 = sphi %s1536_s12, %s2970_s12  }
   0x6   : > { %s1561_s18 = sadd.s32 1, %s1507_s15   ;;  %s26_s19 = sadd.s32 1, %s1503_s14 }
   0x7   : > { %s23_s20 = ssub.s32 %s1507_s15, %s1561_s18  ;;  %p33_p0 = scmp.ne.s32.totalorder %s1503_s14, %s1499_s13 }
   0x8   : > { %p24_p1 = scmp.eq.s32.totalorder %s23_s20, 0  ;;  %p34_p2 = scmp.eq.s32.totalorder %s1507_s15, 0 }
   0x9   : > { %p39_p3 = scmp.ne.s32.totalorder %s1499_s13, %s1495_s12  ;;  %p40_p4 = scmp.eq.s32.totalorder %s1557_s16, 0 }
   0xa   : > { %s1573_s21 = scalar_select %p24_p1, %s1503_s14, %s26_s19  }
   0xb   : > { %p35_p5 = por %p34_p2, %p33_p0  ;;  %p1575_p6 = por %p40_p4, %p39_p3 }
   0xc   : > { %p105_p7 = scmp.eq.s32.totalorder %s1557_s16, 1  ;;  %p111_p8 = scmp.eq.s32.totalorder %s1236_s17, 1 }
   0xd   : > { %p1260_p10 = scmp.lt.s32.totalorder %s1507_s15, 2  ;;  %s137_s25 = sand.u32 1, %s1503_s14  }
   0xe   : > { %p1582_p11 = por %p105_p7, %p33_p0  ;;  %p1586_p12 = por %p111_p8, %p39_p3 }
   0xf   : > { %s1244_s26 = smul.u32 672, %s137_s25  ;;  %p1592_p13 = pnand %p1260_p10, %p35_p5 }
  0x10   : > { %s2855_s23 = scalar_select %p1582_p11, 1, 0 }
  0x11   : > { %s2856_s24 = scalar_select %p1586_p12, 1, 0 }
  0x12   : > { %s1261_s27 = smul.u32 10752, %s1507_s15  ;;  %s141_s5 = scalar_lea.vmem [#allocation2], %s1244_s26 }
  0x13   : > { %s149_s6 = sshll.u32 %s141_s5, 4  ;;  %s1604_s7 = scalar_lea.sflag [#allocation3], %s137_s25  ;;  %s1601_s6 = int_to_ptr.vmem [resolvable:$true] %s149_s6 }
  0x14   : > { %s1599_s4 = scalar_lea.hbm %s2807_s0, %s1261_s27  ;;  %p1413_p2 = pneg %p1592_p13 }
  0x15   : > { %s1411_s8 = scalar_lea.hbm %s1599_s4, 10752  ;;  %s1416_s11 = scalar_lea.hbm %s2807_s0, 21504 }
  0x16   : > { %p1412_p1 = scmp.ne.s32.totalorder %s1599_s4, %s1411_s8  ;;  %p1417_p5 = scmp.lt.u32.totalorder %s1599_s4, %s2807_s0 }
  0x17   : > { %p1418_p7 = scmp.lt.u32.totalorder %s1416_s11, %s1411_s8  ;;  %p1420_p10 = scmp.lt.u32.totalorder %s1411_s8, %s1599_s4 }
  0x18   : > { %p1414_p3 = pnand %p1413_p2, %p1412_p1 }
  0x19   : > { %p1419_p8 = por %p1418_p7, %p1417_p5 }
  0x1a   : > { %p1415_p4 = pneg %p1414_p3 }
  0x1b   : > { %p1421_p9 = por %p1420_p10, %p1419_p8 }
  0x1d   : > { %p1422_p0 = pnand %p1421_p9, %p1415_p4 }
  0x1f   : > { %1425 = shalt.err (!%p1422_p0)
}
  0x20   : > { %s1426_s20 = scalar_lea.vmem %s1601_s6, 10752  ;;  %s1509_s25 = smov [#allocation2]  }
  0x21   : > { %p1427_p1 = scmp.ne.s32.totalorder %s1601_s6, %s1426_s20  ;;  %s1431_s26 = sshll.u32 %s1509_s25, 4  ;;  %s1432_s26 = int_to_ptr.vmem [resolvable:$false] %s1431_s26 }
  0x22   : > { %s1433_s27 = scalar_lea.vmem %s1432_s26, 21504  ;;  %p1434_p11 = scmp.lt.s32.totalorder %s1601_s6, %s1432_s26 }
  0x23   : > { %p1429_p3 = pnand %p1427_p1, %p1413_p2  ;;  %p1435_p5 = scmp.lt.s32.totalorder %s1433_s27, %s1426_s20 }
  0x25   : > { %p1430_p12 = pneg %p1429_p3  ;;  %p1436_p7 = por %p1435_p5, %p1434_p11 }
  0x27   : > { %p1437_p8 = pnand %p1436_p7, %p1430_p12 }
  0x29   : > { %1440 = shalt.err (!%p1437_p8)
}
  0x2a   : > { %s1510_s29 = smov 896   ;;  %s1511_s30 = smov 56  }
  0x2b   : > { %1255 = dma.hbm_to_vmem [thread:$0]  (!%p1592_p13), %s1599_s4, 10752, %s1601_s6, %s1604_s7, %s1510_s29, %s1510_s29, %s1511_s30  }
  0x2c   : > { %p157_p9 = scmp.lt.s32.totalorder %s1507_s15, 3  ;;  %p2858_p0 = scmp.ge.s32.totalorder %s1507_s15, 1 }
  0x2e   : > { %p158_p2 = pnand %p2858_p0, %p157_p9 }
  0x30   : > { %161 = sbr.rel (%p158_p2) target bundleno = 636 (0x27c), region = 32 }
  0x37   : > { %s1636_s5 = sand.u32 1, %s1499_s13  }
  0x38   : > { %s1246_s8 = smul.u32 672, %s1636_s5  ;;  %s164_s9 = scalar_lea.sflag [#allocation3], %s1636_s5 }
  0x3a   : > { %s1642_s10 = scalar_lea.vmem [#allocation2], %s1246_s8 }
  0x3b   : > { %1486 = dma.done.wait (%p1575_p6), %s164_s9, 10752  }
  0x3c   : > { %1488 = vsyncadd (%p1575_p6), %s164_s9, 4294956544  ;;  %v1649_v0 = vld [vmem:[%s1642_s10 + $0x70] sm:$0xff]  ;;  %v1652_v1 = vld [vmem:[%s1642_s10 + $0x78] sm:$0xff]  ;;  %vm281_vm0 = vcmask 130048   ;;  %s709_s22 = smul.u32 96, %s1557_s16  ;;  %s2532_s19 = scalar_lea.vmem [#allocation5], %s1246_s8 }
  0x3d   : > { %v1655_v2 = vld [vmem:[%s1642_s10 + $0x80] sm:$0xff]  ;;  %v295_v3 = vadd.f32 %v1652_v1, %v1649_v0  ;;  %v1660_v4 = vld [vmem:[%s1642_s10 + $0x88] sm:$0xff]  ;;  %v1669_v7 = vld [vmem:[%s1642_s10 + $0x90] sm:$0xff]  ;;  %s1262_s20 = smul.u32 10752, %s1557_s16  ;;  %s1159_s25 = sshll.u32 %s2532_s19, 4  ;;  %s2755_s25 = int_to_ptr.vmem [resolvable:$true] %s1159_s25 }
  0x3e   : > { %v1663_v5 = vld [vmem:[%s1642_s10] sm:$0xff]  ;;  %v1666_v6 = vld [vmem:[%s1642_s10 + $0x8] sm:$0xff]  ;;  %v1673_v9 = vld [vmem:[%s1642_s10 + $0x10] sm:$0xff]  ;;  %s2206_s6 = scalar_lea.vmem %s2808_s1, %s709_s22  ;;  %s2236_s17 = scalar_lea.vmem %s2809_s2, %s709_s22 }
  0x3f   : > { %v296_v8 = vadd.f32 %v295_v3, %v1655_v2  ;;  %v276_v10 = vadd.f32 %v1666_v6, %v1663_v5  ;;  %v1678_v11 = vld [vmem:[%s1642_s10 + $0x98] sm:$0xff]  ;;  %v1684_v13 = vld [vmem:[%s1642_s10 + $0xa8] sm:$0xff]  ;;  %v1687_v14 = vld [vmem:[%s1642_s10 + $0xa0] sm:$0xff]  ;;  %s2753_s29 = scalar_lea.hbm %s2810_s3, %s1262_s20  ;;  %s1145_s16 = scalar_lea.sflag [#allocation4], %s1636_s5 }
  0x40   : > { %v1681_v12 = vld [vmem:[%s1642_s10 + $0x18] sm:$0xff]  ;;  %v1692_v17 = vld [vmem:[%s1642_s10 + $0xb0] sm:$0xff]  ;;  %v1698_v19 = vld [vmem:[%s1642_s10 + $0x20] sm:$0xff]  ;;  %v300_v28 = vsel %vm281_vm0, %v1687_v14, 0.0  ;;  %s1441_s30 = scalar_lea.vmem %s2755_s25, 10752  ;;  %p2967_p11 = scmp.ne.s32.totalorder %s2855_s23, 0 }
  0x41   : > { %v297_v15 = vadd.f32 %v296_v8, %v1660_v4  ;;  %v277_v16 = vadd.f32 %v276_v10, %v1673_v9  ;;  %v1695_v18 = vld [vmem:[%s1642_s10 + $0xb8] sm:$0xff]  ;;  %v1701_v20 = vld [vmem:[%s1642_s10 + $0x30] sm:$0xff]  ;;  %v1704_v21 = vld [vmem:[%s1642_s10 + $0xc0] sm:$0xff]  ;;  %v304_v22 = vadd.f32 %v1692_v17, %v1684_v13  ;;  %p1442_p6 = scmp.ne.s32.totalorder %s2755_s25, %s1441_s30  ;;  %s1513_s8 = smov [#allocation5]  }
  0x42   : > { %v1711_v25 = vld [vmem:[%s1642_s10 + $0x38] sm:$0xff]  ;;  %v1714_v26 = vld [vmem:[%s1642_s10 + $0x40] sm:$0xff]  ;;  %v1717_v27 = vld [vmem:[%s1642_s10 + $0x48] sm:$0xff]  ;;  %v282_v39 = vsel %vm281_vm0, %v1701_v20, 0.0  ;;  %s1445_s9 = sshll.u32 %s1513_s8, 4  ;;  %s1446_s9 = int_to_ptr.vmem [resolvable:$false] %s1445_s9 }
  0x43   : > { %v298_v23 = vadd.f32 %v297_v15, %v1669_v7  ;;  %v278_v24 = vadd.f32 %v277_v16, %v1681_v12  ;;  %v1722_v29 = vld [vmem:[%s1642_s10 + $0x28] sm:$0xff]  ;;  %v305_v31 = vadd.f32 %v304_v22, %v1695_v18  ;;  %v286_v32 = vadd.f32 %v1714_v26, %v1711_v25  ;;  %v1733_v35 = vld [vmem:[%s1642_s10 + $0xd0] sm:$0xff]  ;;  %v1739_v37 = vld [vmem:[%s1642_s10 + $0xe0] sm:$0xff]  ;;  %p1443_p12 = pnand %p1442_p6, %p2967_p11  ;;  %p1448_p4 = scmp.lt.s32.totalorder %s2755_s25, %s1446_s9 }
  0x44   : > { %v1725_v30 = vld [vmem:[%s1642_s10 + $0xc8] sm:$0xff]  ;;  %v1736_v36 = vld [vmem:[%s1642_s10 + $0x50] sm:$0xff]  ;;  %v1747_v40 = vld [vmem:[%s1642_s10 + $0xd8] sm:$0xff] }
  0x45   : > { %v299_v33 = vadd.f32 %v298_v23, %v1678_v11  ;;  %v279_v34 = vadd.f32 %v278_v24, %v1698_v19  ;;  %v1742_v38 = vld [vmem:[%s1642_s10 + $0xe8] sm:$0xff]  ;;  %v306_v41 = vadd.f32 %v305_v31, %v1704_v21  ;;  %v1751_v42 = vld [vmem:[%s1642_s10 + $0x58] sm:$0xff]  ;;  %v287_v43 = vadd.f32 %v286_v32, %v1717_v27  ;;  %v1755_v44 = vld [vmem:[%s1642_s10 + $0xf0] sm:$0xff]  ;;  %p1444_p13 = pneg %p1443_p12 }
  0x46   : > { %v313_v45 = vadd.f32 %v1742_v38, %v1739_v37  ;;  %v1761_v48 = vld [vmem:[%s1642_s10 + $0x60] sm:$0xff]  ;;  %v1764_v49 = vld [vmem:[%s1642_s10 + $0xf8] sm:$0xff]  ;;  %v1771_v52 = vld [vmem:[%s1642_s10 + $0x68] sm:$0xff]  ;;  %v309_v58 = vsel %vm281_vm0, %v1747_v40, 0.0 }
  0x47   : > { %v301_v46 = vadd.f32 %v300_v28, %v299_v33  ;;  %v280_v47 = vadd.f32 %v279_v34, %v1722_v29  ;;  %v1767_v50 = vld [vmem:[%s1642_s10 + $0x118] sm:$0xff]  ;;  %v307_v51 = vadd.f32 %v306_v41, %v1725_v30  ;;  %v288_v53 = vadd.f32 %v287_v43, %v1736_v36  ;;  %v1776_v55 = vld [vmem:[%s1642_s10 + $0x120] sm:$0xff]  ;;  %v1779_v56 = vld [vmem:[%s1642_s10 + $0x128] sm:$0xff] }
  0x48   : > { %v314_v54 = vadd.f32 %v313_v45, %v1755_v44  ;;  %v1784_v59 = vld [vmem:[%s1642_s10 + $0x100] sm:$0xff]  ;;  %v1787_v60 = vld [vmem:[%s1642_s10 + $0x110] sm:$0xff]  ;;  %v322_v62 = vadd.f32 %v1776_v55, %v1767_v50  ;;  %v1801_v15 = vld [vmem:[%s1642_s10 + $0x158] sm:$0xff]  ;;  %v291_v22 = vsel %vm281_vm0, %v1771_v52, 0.0 }
  0x49   : > { %302 = vadd.xlane.f32.xlu1 %v301_v46  ;;  %v283_v57 = vadd.f32 %v282_v39, %v280_v47  ;;  %v1790_v61 = vld [vmem:[%s1642_s10 + $0x130] sm:$0xff]  ;;  %v308_v63 = vadd.f32 %v307_v51, %v1733_v35  ;;  %v289_v3 = vadd.f32 %v288_v53, %v1751_v42  ;;  %2860 = vst [vmem:[#allocation9_spill] sm:$0xff] %v1801_v15  ;;  %v1804_v16 = vld [vmem:[%s1642_s10 + $0x160] sm:$0xff]  ;;  %v1809_v23 = vld [vmem:[%s1642_s10 + $0x108] sm:$0xff]  ;;  %v318_v46 = vsel %vm281_vm0, %v1787_v60, 0.0 }
  0x4a   : > { %v315_v8 = vadd.f32 %v314_v54, %v1764_v49  ;;  %v1798_v10 = vld [vmem:[%s1642_s10 + $0x150] sm:$0xff]  ;;  %2861 = vst [vmem:[#allocation10_spill] sm:$0xff] %v1804_v16  ;;  %v1812_v24 = vld [vmem:[%s1642_s10 + $0x138] sm:$0xff]  ;;  %v323_v28 = vadd.f32 %v322_v62, %v1779_v56  ;;  %v1820_v39 = vld [vmem:[%s1642_s10 + $0x140] sm:$0xff] }
  0x4b   : > { %2859 = vst [vmem:[#allocation8_spill] sm:$0xff] %v1798_v10  ;;  %284 = vadd.xlane.f32.xlu0 %v283_v57  ;;  %2862 = vst [vmem:[#allocation11_spill] sm:$0xff] %v1812_v24  ;;  %v331_v31 = vadd.f32 %v1801_v15, %v1798_v10  ;;  %v310_v32 = vadd.f32 %v309_v58, %v308_v63  ;;  %v290_v33 = vadd.f32 %v289_v3, %v1761_v48  ;;  %v1823_v41 = vld [vmem:[%s1642_s10 + $0x168] sm:$0xff]  ;;  %v1829_v45 = vld [vmem:[%s1642_s10 + $0x190] sm:$0xff] }
  0x4c   : > { %v316_v34 = vadd.f32 %v315_v8, %v1784_v59  ;;  %2863 = vst [vmem:[#allocation12_spill] sm:$0xff] %v1820_v39  ;;  %2864 = vst [vmem:[#allocation13_spill] sm:$0xff] %v1823_v41  ;;  %v1826_v43 = vld [vmem:[%s1642_s10 + $0x188] sm:$0xff]  ;;  %v324_v51 = vadd.f32 %v323_v28, %v1790_v61  ;;  %v1838_v53 = vld [vmem:[%s1642_s10 + $0x170] sm:$0xff] }
  0x4d   : > { %2865 = vst [vmem:[#allocation14_spill] sm:$0xff] %v1826_v43  ;;  %2866 = vst [vmem:[#allocation15_spill] sm:$0xff] %v1829_v45  ;;  %v1834_v47 = vld [vmem:[%s1642_s10 + $0x148] sm:$0xff]  ;;  %v332_v54 = vadd.f32 %v331_v31, %v1804_v16  ;;  %v1842_v57 = vld [vmem:[%s1642_s10 + $0x198] sm:$0xff]  ;;  %v340_v58 = vadd.f32 %v1829_v45, %v1826_v43  ;;  %311 = vadd.xlane.f32.xlu1 %v310_v32  ;;  %v292_v62 = vadd.f32 %v291_v22, %v290_v33 }
  0x4e   : > { %2867 = vst [vmem:[#allocation16_spill] sm:$0xff] %v1834_v47  ;;  %2868 = vst [vmem:[#allocation17_spill] sm:$0xff] %v1838_v53  ;;  %v317_v63 = vadd.f32 %v316_v34, %v1809_v23  ;;  %v1848_v3 = vld [vmem:[%s1642_s10 + $0x178] sm:$0xff]  ;;  %v1851_v8 = vld [vmem:[%s1642_s10 + $0x1a0] sm:$0xff]  ;;  %v325_v31 = vadd.f32 %v324_v51, %v1812_v24  ;;  %v327_v51 = vsel %vm281_vm0, %v1834_v47, 0.0 }
  0x4f   : > { %2869 = vst [vmem:[#allocation18_spill] sm:$0xff] %v1842_v57  ;;  %2870 = vst [vmem:[#allocation19_spill] sm:$0xff] %v1848_v3  ;;  %v1854_v28 = vld [vmem:[%s1642_s10 + $0x1c0] sm:$0xff]  ;;  %v333_v45 = vadd.f32 %v332_v54, %v1823_v41  ;;  %v341_v22 = vadd.f32 %v340_v58, %v1842_v57  ;;  %v1863_v32 = vld [vmem:[%s1642_s10 + $0x1c8] sm:$0xff]  ;;  %293 = vadd.xlane.f32.xlu0 %v292_v62 }
  0x50   : > { %2871 = vst [vmem:[#allocation20_spill] sm:$0xff] %v1851_v8  ;;  %2872 = vst [vmem:[#allocation21_spill] sm:$0xff] %v1854_v28  ;;  %v1858_v16 = vld [vmem:[%s1642_s10 + $0x180] sm:$0xff]  ;;  %v1866_v33 = vld [vmem:[%s1642_s10 + $0x1d0] sm:$0xff]  ;;  %v319_v34 = vadd.f32 %v318_v46, %v317_v63  ;;  %v349_v54 = vadd.f32 %v1863_v32, %v1854_v28  ;;  %v326_v58 = vadd.f32 %v325_v31, %v1820_v39 }
  0x51   : > { %2873 = vst [vmem:[#allocation22_spill] sm:$0xff] %v1858_v16  ;;  %2874 = vst [vmem:[#allocation23_spill] sm:$0xff] %v1863_v32  ;;  %v1871_v43 = vld [vmem:[%s1642_s10 + $0x1a8] sm:$0xff]  ;;  %v1874_v15 = vld [vmem:[%s1642_s10 + $0x1b8] sm:$0xff]  ;;  %v334_v62 = vadd.f32 %v333_v45, %v1838_v53  ;;  %v342_v46 = vadd.f32 %v341_v22, %v1851_v8  ;;  %v336_v47 = vsel %vm281_vm0, %v1858_v16, 0.0 }
  0x52   : > { %2875 = vst [vmem:[#allocation24_spill] sm:$0xff] %v1866_v33  ;;  %2876 = vst [vmem:[#allocation25_spill] sm:$0xff] %v1871_v43  ;;  %v1877_v10 = vld [vmem:[%s1642_s10 + $0x1d8] sm:$0xff]  ;;  %v1888_v57 = vld [vmem:[%s1642_s10 + $0x200] sm:$0xff]  ;;  %v350_v45 = vadd.f32 %v349_v54, %v1866_v33  ;;  %v328_v28 = vadd.f32 %v327_v51, %v326_v58  ;;  %v345_v54 = vsel %vm281_vm0, %v1874_v15, 0.0 }
  0x53   : > { %2877 = vst [vmem:[#allocation26_spill] sm:$0xff] %v1874_v15  ;;  %v1885_v63 = vld [vmem:[%s1642_s10 + $0x1f8] sm:$0xff]  ;;  %2879 = vst [vmem:[#allocation28_spill] sm:$0xff] %v1888_v57  ;;  %v1891_v41 = vld [vmem:[%s1642_s10 + $0x208] sm:$0xff]  ;;  %v335_v8 = vadd.f32 %v334_v62, %v1848_v3  ;;  %v343_v53 = vadd.f32 %v342_v46, %v1871_v43  ;;  %320 = vadd.xlane.f32.xlu0 %v319_v34 }
  0x54   : > { %2878 = vst [vmem:[#allocation27_spill] sm:$0xff] %v1885_v63  ;;  %2880 = vst [vmem:[#allocation29_spill] sm:$0xff] %v1891_v41  ;;  %v1896_v32 = vld [vmem:[%s1642_s10 + $0x1b0] sm:$0xff]  ;;  %v1899_v31 = vld [vmem:[%s1642_s10 + $0x1e0] sm:$0xff]  ;;  %v358_v22 = vadd.f32 %v1888_v57, %v1885_v63  ;;  %v351_v58 = vadd.f32 %v350_v45, %v1877_v10  ;;  %329 = vadd.xlane.f32.xlu1 %v328_v28 }
  0x55   : > { %2881 = vst [vmem:[#allocation30_spill] sm:$0xff] %v1899_v31  ;;  %v1907_v39 = vld [vmem:[%s1642_s10 + $0x210] sm:$0xff]  ;;  %v1913_v24 = vld [vmem:[%s1642_s10 + $0x238] sm:$0xff]  ;;  %v1918_v57 = vld [vmem:[%s1642_s10 + $0x1e8] sm:$0xff]  ;;  %v337_v34 = vadd.f32 %v336_v47, %v335_v8  ;;  %v344_v33 = vadd.f32 %v343_v53, %v1896_v32 }
  0x56   : > { %2882 = vst [vmem:[#allocation31_spill] sm:$0xff] %v1907_v39  ;;  %v1910_v16 = vld [vmem:[%s1642_s10 + $0x230] sm:$0xff]  ;;  %2884 = vst [vmem:[#allocation33_spill] sm:$0xff] %v1913_v24  ;;  %v359_v62 = vadd.f32 %v358_v22, %v1891_v41  ;;  %v1926_v46 = vld [vmem:[%s1642_s10 + $0x240] sm:$0xff]  ;;  %v352_v45 = vadd.f32 %v351_v58, %v1899_v31 }
  0x57   : > { %2883 = vst [vmem:[#allocation32_spill] sm:$0xff] %v1910_v16  ;;  %2885 = vst [vmem:[#allocation34_spill] sm:$0xff] %v1918_v57  ;;  %v1921_v51 = vld [vmem:[%s1642_s10 + $0x1f0] sm:$0xff]  ;;  %v367_v63 = vadd.f32 %v1913_v24, %v1910_v16  ;;  %v1932_v15 = vld [vmem:[%s1642_s10 + $0x218] sm:$0xff]  ;;  %v346_v8 = vadd.f32 %v345_v54, %v344_v33  ;;  %338 = vadd.xlane.f32.xlu0 %v337_v34 }
  0x58   : > { %2886 = vst [vmem:[#allocation35_spill] sm:$0xff] %v1921_v51  ;;  %2887 = vst [vmem:[#allocation36_spill] sm:$0xff] %v1926_v46  ;;  %v1935_v43 = vld [vmem:[%s1642_s10 + $0x248] sm:$0xff]  ;;  %v360_v41 = vadd.f32 %v359_v62, %v1907_v39  ;;  %v1947_v47 = vld [vmem:[%s1642_s10 + $0x270] sm:$0xff]  ;;  %v354_v28 = vsel %vm281_vm0, %v1921_v51, 0.0 }
  0x59   : > { %2888 = vst [vmem:[#allocation37_spill] sm:$0xff] %v1932_v15  ;;  %2889 = vst [vmem:[#allocation38_spill] sm:$0xff] %v1935_v43  ;;  %v1938_v3 = vld [vmem:[%s1642_s10 + $0x268] sm:$0xff]  ;;  %v368_v24 = vadd.f32 %v367_v63, %v1926_v46  ;;  %v1950_v53 = vld [vmem:[%s1642_s10 + $0x278] sm:$0xff]  ;;  %v353_v63 = vadd.f32 %v352_v45, %v1918_v57  ;;  %347 = vadd.xlane.f32.xlu1 %v346_v8 }
  0x5a   : > { %2890 = vst [vmem:[#allocation39_spill] sm:$0xff] %v1938_v3  ;;  %v1942_v22 = vld [vmem:[%s1642_s10 + $0x228] sm:$0xff]  ;;  %2892 = vst [vmem:[#allocation41_spill] sm:$0xff] %v1947_v47  ;;  %v1955_v16 = vld [vmem:[%s1642_s10 + $0x220] sm:$0xff]  ;;  %v376_v31 = vadd.f32 %v1947_v47, %v1938_v3  ;;  %v361_v62 = vadd.f32 %v360_v41, %v1932_v15 }
  0x5b   : > { %2891 = vst [vmem:[#allocation40_spill] sm:$0xff] %v1942_v22  ;;  %2893 = vst [vmem:[#allocation42_spill] sm:$0xff] %v1950_v53  ;;  %v1958_v58 = vld [vmem:[%s1642_s10 + $0x250] sm:$0xff]  ;;  %v1965_v46 = vld [vmem:[%s1642_s10 + $0x260] sm:$0xff]  ;;  %v369_v33 = vadd.f32 %v368_v24, %v1935_v43  ;;  %v363_v39 = vsel %vm281_vm0, %v1942_v22, 0.0  ;;  %v355_v34 = vadd.f32 %v354_v28, %v353_v63 }
  0x5c   : > { %v1969_v54 = vld [vmem:[%s1642_s10 + $0x280] sm:$0xff]  ;;  %v1974_v51 = vld [vmem:[%s1642_s10 + $0x258] sm:$0xff]  ;;  %v377_v47 = vadd.f32 %v376_v31, %v1950_v53  ;;  %v362_v45 = vadd.f32 %v361_v62, %v1955_v16  ;;  %v1980_v3 = vld [vmem:[%s1642_s10 + $0x288] sm:$0xff]  ;;  %v372_v24 = vsel %vm281_vm0, %v1965_v46, 0.0 }
  0x5d   : > { %2894 = vst [vmem:[#allocation43_spill] sm:$0xff] %v1969_v54  ;;  %2895 = vst [vmem:[#allocation44_spill] sm:$0xff] %v1974_v51  ;;  %v370_v41 = vadd.f32 %v369_v33, %v1958_v58  ;;  %v1985_v43 = vld [vmem:[%s1642_s10 + $0x298] sm:$0xff]  ;;  %356 = vadd.xlane.f32.xlu0 %v355_v34  ;;  %v1990_v57 = vld [vmem:[%s1642_s10 + $0x290] sm:$0xff] }
  0x5e   : > { %2896 = vst [vmem:[#allocation45_spill] sm:$0xff] %v1980_v3  ;;  %2897 = vst [vmem:[#allocation46_spill] sm:$0xff] %v1985_v43  ;;  %v378_v8 = vadd.f32 %v377_v47, %v1969_v54  ;;  %v364_v22 = vadd.f32 %v363_v39, %v362_v45  ;;  %v381_v63 = vsel %vm281_vm0, %v1985_v43, 0.0 }
  0x5f   : > { %v371_v15 = vadd.f32 %v370_v41, %v1974_v51  ;;  %2898 = vst [vmem:[#allocation47_spill] sm:$0xff] %v1990_v57 }
  0x60   : > { %v379_v31 = vadd.f32 %v378_v8, %v1980_v3  ;;  %365 = vadd.xlane.f32.xlu1 %v364_v22 }
  0x61   : > { %v373_v28 = vadd.f32 %v372_v24, %v371_v15 }
  0x62   : > { %v380_v62 = vadd.f32 %v379_v31, %v1990_v57 }
  0x63   : > { %374 = vadd.xlane.f32.xlu0 %v373_v28 }
  0x64   : > { %v382_v33 = vadd.f32 %v381_v63, %v380_v62 }
  0x66   : > { %383 = vadd.xlane.f32.xlu1 %v382_v33 }
  0xd6   : > { %v303_v53 = vpop.xlane.xlu1 %302 }
  0xd7   : > { %v1996_v47 = vmul.f32 0.0012755102, %v303_v53 }
  0xd8   : > { %v285_v39 = vpop.xlane.xlu0 %284 }
  0xd9   : > { %v1998_v34 = vmul.f32 0.0012755102, %v285_v39  ;;  %v411_v45 = vsub.f32 %v1649_v0, %v1996_v47  ;;  %v412_v15 = vsub.f32 %v1652_v1, %v1996_v47  ;;  %v413_v22 = vsub.f32 %v1655_v2, %v1996_v47 }
  0xda   : > { %v414_v41 = vsub.f32 %v1660_v4, %v1996_v47  ;;  %v312_v24 = vpop.xlane.xlu1 %311  ;;  %v415_v0 = vsub.f32 %v1669_v7, %v1996_v47  ;;  %v417_v7 = vsub.f32 %v1687_v14, %v1996_v47 }
  0xdb   : > { %2899 = vst [vmem:[#allocation48_spill] sm:$0xff] %v1998_v34  ;;  %v397_v53 = vsub.f32 %v1663_v5, %v1998_v34  ;;  %v398_v8 = vsub.f32 %v1666_v6, %v1998_v34  ;;  %v399_v31 = vsub.f32 %v1673_v9, %v1998_v34  ;;  %v400_v1 = vsub.f32 %v1681_v12, %v1998_v34 }
  0xdc   : > { %v401_v2 = vsub.f32 %v1698_v19, %v1998_v34  ;;  %v402_v4 = vsub.f32 %v1722_v29, %v1998_v34  ;;  %v403_v5 = vsub.f32 %v1701_v20, %v1998_v34  ;;  %v294_v28 = vpop.xlane.xlu0 %293  ;;  %v416_v9 = vsub.f32 %v1678_v11, %v1996_v47 }
  0xdd   : > { %v481_v6 = vmul.f32 %v397_v53, %v397_v53  ;;  %v482_v63 = vmul.f32 %v398_v8, %v398_v8  ;;  %v2028_v62 = vmul.f32 0.0012755102, %v312_v24  ;;  %v2030_v12 = vmul.f32 0.0012755102, %v294_v28 }
  0xde   : > { %v483_v19 = vmul.f32 %v399_v31, %v399_v31  ;;  %v487_v33 = vmul.f32 %v403_v5, %v403_v5  ;;  %v495_v29 = vmul.f32 %v411_v45, %v411_v45  ;;  %v496_v57 = vmul.f32 %v412_v15, %v412_v15 }
  0xdf   : > { %v565_v39 = vadd.f32 %v482_v63, %v481_v6  ;;  %v497_v43 = vmul.f32 %v413_v22, %v413_v22  ;;  %v484_v20 = vmul.f32 %v400_v1, %v400_v1  ;;  %v485_v34 = vmul.f32 %v401_v2, %v401_v2 }
  0xe0   : > { %v486_v53 = vmul.f32 %v402_v4, %v402_v4  ;;  %v570_v8 = vsel %vm281_vm0, %v487_v33, 0.0  ;;  %v321_v3 = vpop.xlane.xlu0 %320  ;;  %v498_v54 = vmul.f32 %v414_v41, %v414_v41  ;;  %v583_v51 = vadd.f32 %v496_v57, %v495_v29 }
  0xe1   : > { %v566_v11 = vadd.f32 %v565_v39, %v483_v19  ;;  %v404_v14 = vsub.f32 %v1711_v25, %v2030_v12  ;;  %v330_v24 = vpop.xlane.xlu1 %329  ;;  %v499_v28 = vmul.f32 %v415_v0, %v415_v0  ;;  %v501_v31 = vmul.f32 %v417_v7, %v417_v7 }
  0xe2   : > { %v405_v45 = vsub.f32 %v1714_v26, %v2030_v12  ;;  %v406_v15 = vsub.f32 %v1717_v27, %v2030_v12  ;;  %v500_v1 = vmul.f32 %v416_v9, %v416_v9  ;;  %v584_v2 = vadd.f32 %v583_v51, %v497_v43 }
  0xe3   : > { %v567_v22 = vadd.f32 %v566_v11, %v484_v20  ;;  %v407_v4 = vsub.f32 %v1736_v36, %v2030_v12  ;;  %v2041_v41 = vmul.f32 0.0012755102, %v321_v3  ;;  %v2043_v57 = vmul.f32 0.0012755102, %v330_v24 }
  0xe4   : > { %v410_v25 = vsub.f32 %v1771_v52, %v2030_v12  ;;  %v488_v0 = vmul.f32 %v404_v14, %v404_v14  ;;  %v339_v5 = vpop.xlane.xlu0 %338  ;;  %v585_v26 = vadd.f32 %v584_v2, %v498_v54  ;;  %v408_v27 = vsub.f32 %v1751_v42, %v2030_v12 }
  0xe5   : > { %v568_v6 = vadd.f32 %v567_v22, %v485_v34  ;;  %v489_v63 = vmul.f32 %v405_v45, %v405_v45  ;;  %v2049_v9 = vmul.f32 0.0012755102, %v339_v5  ;;  %v588_v36 = vsel %vm281_vm0, %v501_v31, 0.0 }
  0xe6   : > { %v348_v43 = vpop.xlane.xlu1 %347  ;;  %v409_v3 = vsub.f32 %v1761_v48, %v2030_v12  ;;  %v490_v51 = vmul.f32 %v406_v15, %v406_v15  ;;  %v586_v19 = vadd.f32 %v585_v26, %v499_v28  ;;  %v491_v52 = vmul.f32 %v407_v4, %v407_v4 }
  0xe7   : > { %v569_v7 = vadd.f32 %v568_v6, %v486_v53  ;;  %v494_v33 = vmul.f32 %v410_v25, %v410_v25  ;;  %v574_v39 = vadd.f32 %v489_v63, %v488_v0  ;;  %v418_v54 = vsub.f32 %v1684_v13, %v2028_v62 }
  0xe8   : > { %v419_v42 = vsub.f32 %v1692_v17, %v2028_v62  ;;  %v420_v34 = vsub.f32 %v1695_v18, %v2028_v62  ;;  %v587_v11 = vadd.f32 %v586_v19, %v500_v1  ;;  %v492_v14 = vmul.f32 %v408_v27, %v408_v27 }
  0xe9   : > { %v571_v20 = vadd.f32 %v570_v8, %v569_v7  ;;  %v421_v48 = vsub.f32 %v1704_v21, %v2028_v62  ;;  %v2062_v53 = vmul.f32 0.0012755102, %v348_v43  ;;  %v493_v24 = vmul.f32 %v409_v3, %v409_v3 }
  0xea   : > { %v357_v29 = vpop.xlane.xlu0 %356  ;;  %v575_v28 = vadd.f32 %v574_v39, %v490_v51  ;;  %v579_v31 = vsel %vm281_vm0, %v494_v33, 0.0  ;;  %v422_v17 = vsub.f32 %v1725_v30, %v2028_v62  ;;  %v424_v18 = vsub.f32 %v1747_v40, %v2028_v62 }
  0xeb   : > { %572 = vadd.xlane.f32.xlu0 %v571_v20  ;;  %v502_v8 = vmul.f32 %v418_v54, %v418_v54  ;;  %v503_v45 = vmul.f32 %v419_v42, %v419_v42  ;;  %v2069_v15 = vmul.f32 0.0012755102, %v357_v29  ;;  %v423_v21 = vsub.f32 %v1733_v35, %v2028_v62 }
  0xec   : > { %v576_v22 = vadd.f32 %v575_v28, %v491_v52  ;;  %v504_v1 = vmul.f32 %v420_v34, %v420_v34  ;;  %v589_v25 = vadd.f32 %v588_v36, %v587_v11  ;;  %v505_v0 = vmul.f32 %v421_v48, %v421_v48 }
  0xed   : > { %v366_v13 = vpop.xlane.xlu1 %365  ;;  %v592_v5 = vadd.f32 %v503_v45, %v502_v8  ;;  %v508_v30 = vmul.f32 %v424_v18, %v424_v18  ;;  %v425_v40 = vsub.f32 %v1739_v37, %v2041_v41  ;;  %v426_v26 = vsub.f32 %v1742_v38, %v2041_v41 }
  0xee   : > { %v2073_v2 = vmul.f32 0.0012755102, %v366_v13  ;;  %v577_v6 = vadd.f32 %v576_v22, %v492_v14  ;;  %v506_v27 = vmul.f32 %v422_v17, %v422_v17  ;;  %v427_v35 = vsub.f32 %v1755_v44, %v2041_v41 }
  0xef   : > { %590 = vadd.xlane.f32.xlu0 %v589_v25  ;;  %v593_v63 = vadd.f32 %v592_v5, %v504_v1  ;;  %v428_v43 = vsub.f32 %v1764_v49, %v2041_v41  ;;  %v507_v51 = vmul.f32 %v423_v21, %v423_v21  ;;  %v431_v7 = vsub.f32 %v1787_v60, %v2041_v41 }
  0xf0   : > { %v375_v4 = vpop.xlane.xlu0 %374  ;;  %v578_v3 = vadd.f32 %v577_v6, %v493_v24  ;;  %v429_v38 = vsub.f32 %v1784_v59, %v2041_v41  ;;  %v509_v19 = vmul.f32 %v425_v40, %v425_v40  ;;  %v510_v52 = vmul.f32 %v426_v26, %v426_v26  ;;  %v2900_v24 = vld [vmem:[#allocation11_spill] sm:$0xff]  ;;  %v2904_v6 = vld [vmem:[#allocation9_spill] sm:$0xff]  ;;  %v2905_v40 = vld [vmem:[#allocation10_spill] sm:$0xff] }
  0xf1   : > { %v2083_v36 = vmul.f32 0.0012755102, %v375_v4  ;;  %v594_v37 = vadd.f32 %v593_v63, %v505_v0  ;;  %v597_v39 = vsel %vm281_vm0, %v508_v30, 0.0  ;;  %v430_v44 = vsub.f32 %v1809_v23, %v2041_v41  ;;  %v2903_v0 = vld [vmem:[#allocation8_spill] sm:$0xff] }
  0xf2   : > { %v580_v33 = vadd.f32 %v579_v31, %v578_v3  ;;  %v511_v49 = vmul.f32 %v427_v35, %v427_v35  ;;  %v512_v42 = vmul.f32 %v428_v43, %v428_v43  ;;  %v515_v34 = vmul.f32 %v431_v7, %v431_v7  ;;  %v2901_v31 = vld [vmem:[#allocation12_spill] sm:$0xff]  ;;  %v2906_v3 = vld [vmem:[#allocation13_spill] sm:$0xff] }
  0xf3   : > { %v595_v54 = vadd.f32 %v594_v37, %v506_v27  ;;  %v601_v29 = vadd.f32 %v510_v52, %v509_v19  ;;  %v432_v60 = vsub.f32 %v1767_v50, %v2043_v57  ;;  %v433_v59 = vsub.f32 %v1776_v55, %v2043_v57  ;;  %v2902_v50 = vld [vmem:[#allocation16_spill] sm:$0xff]  ;;  %v384_v27 = vpop.xlane.xlu1 %383  ;;  %v2907_v37 = vld [vmem:[#allocation17_spill] sm:$0xff]  ;;  %v2908_v19 = vld [vmem:[#allocation22_spill] sm:$0xff] }
  0xf4   : > { %581 = vadd.xlane.f32.xlu1 %v580_v33  ;;  %v434_v20 = vsub.f32 %v1779_v56, %v2043_v57  ;;  %v435_v11 = vsub.f32 %v1790_v61, %v2043_v57  ;;  %v513_v23 = vmul.f32 %v429_v38, %v429_v38  ;;  %v436_v28 = vsub.f32 %v2900_v24, %v2043_v57 }
  0xf5   : > { %v596_v14 = vadd.f32 %v595_v54, %v507_v51  ;;  %v602_v48 = vadd.f32 %v601_v29, %v511_v49  ;;  %v437_v13 = vsub.f32 %v2901_v31, %v2043_v57  ;;  %v438_v17 = vsub.f32 %v2902_v50, %v2043_v57 }
  0xf6   : > { %v516_v18 = vmul.f32 %v432_v60, %v432_v60  ;;  %v517_v55 = vmul.f32 %v433_v59, %v433_v59  ;;  %v514_v45 = vmul.f32 %v430_v44, %v430_v44  ;;  %v518_v22 = vmul.f32 %v434_v20, %v434_v20  ;;  %v2909_v44 = vld [vmem:[#allocation19_spill] sm:$0xff] }
  0xf7   : > { %v598_v8 = vadd.f32 %v597_v39, %v596_v14  ;;  %v603_v56 = vadd.f32 %v602_v48, %v512_v42  ;;  %v606_v61 = vsel %vm281_vm0, %v515_v34, 0.0  ;;  %v519_v21 = vmul.f32 %v435_v11, %v435_v11  ;;  %v2910_v14 = vld [vmem:[#allocation14_spill] sm:$0xff]  ;;  %v2911_v48 = vld [vmem:[#allocation15_spill] sm:$0xff] }
  0xf8   : > { %v520_v1 = vmul.f32 %v436_v28, %v436_v28  ;;  %v610_v4 = vadd.f32 %v517_v55, %v516_v18  ;;  %v439_v5 = vsub.f32 %v2903_v0, %v2049_v9  ;;  %v440_v30 = vsub.f32 %v2904_v6, %v2049_v9 }
  0xf9   : > { %599 = vadd.xlane.f32.xlu1 %v598_v8  ;;  %v604_v25 = vadd.f32 %v603_v56, %v513_v23  ;;  %v441_v26 = vsub.f32 %v2905_v40, %v2049_v9  ;;  %v521_v63 = vmul.f32 %v437_v13, %v437_v13  ;;  %v522_v35 = vmul.f32 %v438_v17, %v438_v17  ;;  %v2912_v13 = vld [vmem:[#allocation18_spill] sm:$0xff]  ;;  %v2913_v17 = vld [vmem:[#allocation20_spill] sm:$0xff]  ;;  %v2914_v56 = vld [vmem:[#allocation25_spill] sm:$0xff] }
  0xfa   : > { %v611_v43 = vadd.f32 %v610_v4, %v518_v22  ;;  %v442_v51 = vsub.f32 %v2906_v3, %v2049_v9  ;;  %v443_v38 = vsub.f32 %v2907_v37, %v2049_v9  ;;  %v445_v52 = vsub.f32 %v2908_v19, %v2049_v9 }
  0xfb   : > { %v605_v7 = vadd.f32 %v604_v25, %v514_v45  ;;  %v523_v33 = vmul.f32 %v439_v5, %v439_v5  ;;  %v444_v49 = vsub.f32 %v2909_v44, %v2049_v9  ;;  %v524_v54 = vmul.f32 %v440_v30, %v440_v30 }
  0xfc   : > { %v612_v39 = vadd.f32 %v611_v43, %v519_v21  ;;  %v525_v42 = vmul.f32 %v441_v26, %v441_v26  ;;  %v2121_v34 = vmul.f32 0.0012755102, %v384_v27  ;;  %v526_v60 = vmul.f32 %v442_v51, %v442_v51  ;;  %v2916_v27 = vld [vmem:[#allocation21_spill] sm:$0xff] }
  0xfd   : > { %v607_v29 = vadd.f32 %v606_v61, %v605_v7  ;;  %v529_v59 = vmul.f32 %v445_v52, %v445_v52  ;;  %v619_v11 = vadd.f32 %v524_v54, %v523_v33  ;;  %v446_v23 = vsub.f32 %v2910_v14, %v2062_v53  ;;  %v2915_v61 = vld [vmem:[#allocation26_spill] sm:$0xff]  ;;  %v2918_v7 = vld [vmem:[#allocation24_spill] sm:$0xff] }
  0xfe   : > { %v613_v20 = vadd.f32 %v612_v39, %v520_v1  ;;  %v447_v24 = vsub.f32 %v2911_v48, %v2062_v53  ;;  %v615_v28 = vsel %vm281_vm0, %v522_v35, 0.0  ;;  %v527_v31 = vmul.f32 %v443_v38, %v443_v38  ;;  %v2917_v35 = vld [vmem:[#allocation23_spill] sm:$0xff] }
  0xff   : > { %608 = vadd.xlane.f32.xlu0 %v607_v29  ;;  %v448_v50 = vsub.f32 %v2912_v13, %v2062_v53  ;;  %v449_v18 = vsub.f32 %v2913_v17, %v2062_v53  ;;  %v528_v8 = vmul.f32 %v444_v49, %v444_v49  ;;  %v620_v45 = vadd.f32 %v619_v11, %v525_v42  ;;  %v2920_v39 = vld [vmem:[#allocation35_spill] sm:$0xff]  ;;  %v2923_v13 = vld [vmem:[#allocation28_spill] sm:$0xff]  ;;  %v2924_v17 = vld [vmem:[#allocation29_spill] sm:$0xff] }
 0x100   : > { %v614_v55 = vadd.f32 %v613_v20, %v521_v63  ;;  %v450_v22 = vsub.f32 %v2914_v56, %v2062_v53  ;;  %v452_v21 = vsub.f32 %v2915_v61, %v2062_v53  ;;  %v530_v1 = vmul.f32 %v446_v23, %v446_v23  ;;  %v2921_v20 = vld [vmem:[#allocation34_spill] sm:$0xff]  ;;  %v2926_v61 = vld [vmem:[#allocation37_spill] sm:$0xff] }
 0x101   : > { %v531_v4 = vmul.f32 %v447_v24, %v447_v24  ;;  %v532_v25 = vmul.f32 %v448_v50, %v448_v50  ;;  %v621_v5 = vadd.f32 %v620_v45, %v526_v60  ;;  %v624_v6 = vsel %vm281_vm0, %v529_v59, 0.0  ;;  %v2922_v24 = vld [vmem:[#allocation27_spill] sm:$0xff] }
 0x102   : > { %v616_v0 = vadd.f32 %v615_v28, %v614_v55  ;;  %v451_v30 = vsub.f32 %v1896_v32, %v2062_v53  ;;  %v533_v40 = vmul.f32 %v449_v18, %v449_v18  ;;  %v453_v63 = vsub.f32 %v2916_v27, %v2069_v15  ;;  %v2919_v32 = vld [vmem:[#allocation30_spill] sm:$0xff]  ;;  %v2925_v55 = vld [vmem:[#allocation31_spill] sm:$0xff] }
 0x103   : > { %v628_v26 = vadd.f32 %v531_v4, %v530_v1  ;;  %v454_v43 = vsub.f32 %v2917_v35, %v2069_v15  ;;  %v622_v3 = vadd.f32 %v621_v5, %v527_v31  ;;  %v534_v51 = vmul.f32 %v450_v22, %v450_v22 }
 0x104   : > { %617 = vadd.xlane.f32.xlu1 %v616_v0  ;;  %v455_v37 = vsub.f32 %v2918_v7, %v2069_v15  ;;  %v456_v38 = vsub.f32 %v1877_v10, %v2069_v15  ;;  %v536_v19 = vmul.f32 %v452_v21, %v452_v21  ;;  %v457_v33 = vsub.f32 %v2919_v32, %v2069_v15 }
 0x105   : > { %v629_v52 = vadd.f32 %v628_v26, %v532_v25  ;;  %v459_v44 = vsub.f32 %v2920_v39, %v2069_v15  ;;  %v623_v49 = vadd.f32 %v622_v3, %v528_v8  ;;  %v537_v54 = vmul.f32 %v453_v63, %v453_v63  ;;  %v2931_v39 = vld [vmem:[#allocation38_spill] sm:$0xff] }
 0x106   : > { %v538_v42 = vmul.f32 %v454_v43, %v454_v43  ;;  %v539_v29 = vmul.f32 %v455_v37, %v455_v37  ;;  %v535_v60 = vmul.f32 %v451_v30, %v451_v30  ;;  %v458_v11 = vsub.f32 %v2921_v20, %v2069_v15  ;;  %v2927_v30 = vld [vmem:[#allocation40_spill] sm:$0xff]  ;;  %v2929_v37 = vld [vmem:[#allocation33_spill] sm:$0xff] }
 0x107   : > { %v630_v59 = vadd.f32 %v629_v52, %v533_v40  ;;  %v540_v14 = vmul.f32 %v456_v38, %v456_v38  ;;  %v625_v23 = vadd.f32 %v624_v6, %v623_v49  ;;  %v543_v10 = vmul.f32 %v459_v44, %v459_v44  ;;  %v2930_v38 = vld [vmem:[#allocation36_spill] sm:$0xff] }
 0x108   : > { %v637_v48 = vadd.f32 %v538_v42, %v537_v54  ;;  %v460_v28 = vsub.f32 %v2922_v24, %v2073_v2  ;;  %v461_v50 = vsub.f32 %v2923_v13, %v2073_v2  ;;  %v462_v18 = vsub.f32 %v2924_v17, %v2073_v2 }
 0x109   : > { %v631_v31 = vadd.f32 %v630_v59, %v534_v51  ;;  %v463_v8 = vsub.f32 %v2925_v55, %v2073_v2  ;;  %626 = vadd.xlane.f32.xlu0 %v625_v23  ;;  %v633_v45 = vsel %vm281_vm0, %v536_v19, 0.0  ;;  %v541_v56 = vmul.f32 %v457_v33, %v457_v33  ;;  %v2928_v51 = vld [vmem:[#allocation32_spill] sm:$0xff]  ;;  %v2936_v55 = vld [vmem:[#allocation43_spill] sm:$0xff] }
 0x10a   : > { %v638_v22 = vadd.f32 %v637_v48, %v539_v29  ;;  %v464_v21 = vsub.f32 %v2926_v61, %v2073_v2  ;;  %v465_v4 = vsub.f32 %v1955_v16, %v2073_v2  ;;  %v544_v25 = vmul.f32 %v460_v28, %v460_v28  ;;  %v2932_v23 = vld [vmem:[#allocation44_spill] sm:$0xff] }
 0x10b   : > { %v632_v1 = vadd.f32 %v631_v31, %v535_v60  ;;  %v545_v0 = vmul.f32 %v461_v50, %v461_v50  ;;  %v542_v5 = vmul.f32 %v458_v11, %v458_v11  ;;  %v466_v40 = vsub.f32 %v2927_v30, %v2073_v2  ;;  %v2933_v31 = vld [vmem:[#allocation39_spill] sm:$0xff]  ;;  %v2934_v50 = vld [vmem:[#allocation41_spill] sm:$0xff] }
 0x10c   : > { %v639_v6 = vadd.f32 %v638_v22, %v540_v14  ;;  %v546_v26 = vmul.f32 %v462_v18, %v462_v18  ;;  %v642_v63 = vsel %vm281_vm0, %v543_v10, 0.0  ;;  %v547_v35 = vmul.f32 %v463_v8, %v463_v8 }
 0x10d   : > { %v634_v27 = vadd.f32 %v633_v45, %v632_v1  ;;  %v646_v43 = vadd.f32 %v545_v0, %v544_v25  ;;  %v467_v7 = vsub.f32 %v2928_v51, %v2083_v36  ;;  %v468_v16 = vsub.f32 %v2929_v37, %v2083_v36 }
 0x10e   : > { %v640_v3 = vadd.f32 %v639_v6, %v541_v56  ;;  %v469_v19 = vsub.f32 %v2930_v38, %v2083_v36  ;;  %v548_v52 = vmul.f32 %v464_v21, %v464_v21  ;;  %v549_v32 = vmul.f32 %v465_v4, %v465_v4  ;;  %v2937_v21 = vld [vmem:[#allocation45_spill] sm:$0xff] }
 0x10f   : > { %635 = vadd.xlane.f32.xlu1 %v634_v27  ;;  %v647_v33 = vadd.f32 %v646_v43, %v546_v26  ;;  %v470_v44 = vsub.f32 %v2931_v39, %v2083_v36  ;;  %v550_v54 = vmul.f32 %v466_v40, %v466_v40  ;;  %v471_v42 = vsub.f32 %v1958_v58, %v2083_v36  ;;  %v2938_v40 = vld [vmem:[#allocation46_spill] sm:$0xff]  ;;  %v2939_v27 = vld [vmem:[#allocation47_spill] sm:$0xff] }
 0x110   : > { %v641_v49 = vadd.f32 %v640_v3, %v542_v5  ;;  %v551_v29 = vmul.f32 %v467_v7, %v467_v7  ;;  %v473_v59 = vsub.f32 %v1965_v46, %v2083_v36  ;;  %v552_v20 = vmul.f32 %v468_v16, %v468_v16  ;;  %v2935_v46 = vld [vmem:[#allocation42_spill] sm:$0xff] }
 0x111   : > { %v648_v60 = vadd.f32 %v647_v33, %v547_v35  ;;  %v553_v11 = vmul.f32 %v469_v19, %v469_v19  ;;  %v472_v10 = vsub.f32 %v2932_v23, %v2083_v36  ;;  %v554_v48 = vmul.f32 %v470_v44, %v470_v44 }
 0x112   : > { %v643_v14 = vadd.f32 %v642_v63, %v641_v49  ;;  %v655_v28 = vadd.f32 %v552_v20, %v551_v29  ;;  %v474_v13 = vsub.f32 %v2933_v31, %v2121_v34  ;;  %v475_v58 = vsub.f32 %v2934_v50, %v2121_v34 }
 0x113   : > { %v649_v24 = vadd.f32 %v648_v60, %v548_v52  ;;  %v651_v17 = vsel %vm281_vm0, %v550_v54, 0.0  ;;  %v476_v18 = vsub.f32 %v2935_v46, %v2121_v34  ;;  %v477_v8 = vsub.f32 %v2936_v55, %v2121_v34  ;;  %v712_v46 = vld [vmem:[%s2206_s6 + $0x8] sm:$0xff] }
 0x114   : > { %644 = vadd.xlane.f32.xlu0 %v643_v14  ;;  %v555_v56 = vmul.f32 %v471_v42, %v471_v42  ;;  %v557_v22 = vmul.f32 %v473_v59, %v473_v59  ;;  %v656_v61 = vadd.f32 %v655_v28, %v553_v11  ;;  %v478_v1 = vsub.f32 %v2937_v21, %v2121_v34 }
 0x115   : > { %v650_v45 = vadd.f32 %v649_v24, %v549_v32  ;;  %v558_v4 = vmul.f32 %v474_v13, %v474_v13  ;;  %v559_v25 = vmul.f32 %v475_v58, %v475_v58  ;;  %v560_v0 = vmul.f32 %v476_v18, %v476_v18 }
 0x116   : > { %v556_v6 = vmul.f32 %v472_v10, %v472_v10  ;;  %v657_v30 = vadd.f32 %v656_v61, %v554_v48  ;;  %v480_v26 = vsub.f32 %v2938_v40, %v2121_v34  ;;  %v479_v63 = vsub.f32 %v2939_v27, %v2121_v34  ;;  %v711_v48 = vld [vmem:[%s2206_s6] sm:$0xff]  ;;  %v713_v61 = vld [vmem:[%s2206_s6 + $0x10] sm:$0xff] }
 0x117   : > { %v652_v5 = vadd.f32 %v651_v17, %v650_v45  ;;  %v561_v35 = vmul.f32 %v477_v8, %v477_v8  ;;  %v664_v43 = vadd.f32 %v559_v25, %v558_v4  ;;  %v660_v51 = vsel %vm281_vm0, %v557_v22, 0.0  ;;  %v714_v25 = vld [vmem:[%s2206_s6 + $0x18] sm:$0xff]  ;;  %v715_v40 = vld [vmem:[%s2206_s6 + $0x20] sm:$0xff] }
 0x118   : > { %v658_v3 = vadd.f32 %v657_v30, %v555_v56  ;;  %v562_v7 = vmul.f32 %v478_v1, %v478_v1  ;;  %v564_v38 = vmul.f32 %v480_v26, %v480_v26  ;;  %v563_v19 = vmul.f32 %v479_v63, %v479_v63 }
 0x119   : > { %653 = vadd.xlane.f32.xlu1 %v652_v5  ;;  %v665_v37 = vadd.f32 %v664_v43, %v560_v0  ;;  %v1512_v54 = vmov 0   ;;  %v716_v43 = vld [vmem:[%s2206_s6 + $0x28] sm:$0xff] }
 0x11a   : > { %v659_v16 = vadd.f32 %v658_v3, %v556_v6  ;;  %v669_v39 = vsel %vm281_vm0, %v564_v38, 0.0  ;;  %1301 = vset.pattern.permute.xlu0 %v1512_v54  ;;  %1302 = vset.pattern.permute.xlu1 %v1512_v54 }
 0x11b   : > { %v666_v52 = vadd.f32 %v665_v37, %v561_v35 }
 0x11c   : > { %v661_v32 = vadd.f32 %v660_v51, %v659_v16 }
 0x11d   : > { %v667_v33 = vadd.f32 %v666_v52, %v562_v7 }
 0x11e   : > { %662 = vadd.xlane.f32.xlu0 %v661_v32 }
 0x11f   : > { %v668_v44 = vadd.f32 %v667_v33, %v563_v19  ;;  %v717_v19 = vld [vmem:[%s2206_s6 + $0x30] sm:$0xff] }
 0x121   : > { %v670_v49 = vadd.f32 %v669_v39, %v668_v44 }
 0x123   : > { %671 = vadd.xlane.f32.xlu1 %v670_v49  ;;  %v718_v49 = vld [vmem:[%s2206_s6 + $0x38] sm:$0xff] }
 0x178   : > { %v573_v42 = vpop.xlane.xlu0 %572 }
 0x179   : > { %v673_v29 = vmul.f32 0.0012755102, %v573_v42 }
 0x17b   : > { %v685_v60 = vadd.f32 1e-05, %v673_v29 }
 0x17c   : > { %v591_v59 = vpop.xlane.xlu0 %590 }
 0x17d   : > { %1303 = vrsqrt.f32 %v685_v60  ;;  %v675_v20 = vmul.f32 0.0012755102, %v591_v59  ;;  %v719_v59 = vld [vmem:[%s2206_s6 + $0x40] sm:$0xff] }
 0x17f   : > { %v687_v10 = vadd.f32 1e-05, %v675_v20 }
 0x181   : > { %v582_v11 = vpop.xlane.xlu1 %581 }
 0x182   : > { %v674_v14 = vmul.f32 0.0012755102, %v582_v11 }
 0x184   : > { %v686_v23 = vadd.f32 1e-05, %v674_v14 }
 0x186   : > { %1305 = vrsqrt.f32 %v686_v23  ;;  %v600_v24 = vpop.xlane.xlu1 %599 }
 0x187   : > { %v1304_v28 = vpop.eup %1303  ;;  %v676_v31 = vmul.f32 0.0012755102, %v600_v24  ;;  %1307 = vrsqrt.f32 %v687_v10 }
 0x188   : > { %v2209_v13 = vmul.f32 %v1304_v28, %v711_v48  ;;  %v720_v48 = vld [vmem:[%s2206_s6 + $0x48] sm:$0xff] }
 0x189   : > { %v688_v50 = vadd.f32 1e-05, %v676_v31 }
 0x18a   : > { %774 = vperm.xlu0 %1301, %v2209_v13  }
 0x18b   : > { %1309 = vrsqrt.f32 %v688_v50  ;;  %v721_v50 = vld [vmem:[%s2206_s6 + $0x50] sm:$0xff] }
 0x18c   : > { %v609_v58 = vpop.xlane.xlu0 %608 }
 0x18d   : > { %v677_v17 = vmul.f32 0.0012755102, %v609_v58 }
 0x18f   : > { %v689_v18 = vadd.f32 1e-05, %v677_v17 }
 0x190   : > { %v1306_v55 = vpop.eup %1305 }
 0x191   : > { %1311 = vrsqrt.f32 %v689_v18  ;;  %v618_v8 = vpop.xlane.xlu1 %617  ;;  %v2213_v45 = vmul.f32 %v1306_v55, %v712_v46  ;;  %v1308_v56 = vpop.eup %1307  ;;  %v2940_v46 = vld [vmem:[#allocation48_spill] sm:$0xff] }
 0x192   : > { %v678_v22 = vmul.f32 0.0012755102, %v618_v8  ;;  %v2217_v1 = vmul.f32 %v1308_v56, %v713_v61  ;;  %v748_v18 = vmul.f32 %v2209_v13, %v2940_v46  ;;  %v724_v55 = vld [vmem:[%s2236_s17] sm:$0xff]  ;;  %v722_v8 = vld [vmem:[%s2206_s6 + $0x58] sm:$0xff] }
 0x193   : > { %779 = vperm.xlu1 %1302, %v2213_v45   ;;  %v1335_v46 = vld [vmem:[%s1642_s10 + $0x40] sm:$0xff] }
 0x194   : > { %v690_v21 = vadd.f32 1e-05, %v678_v22  ;;  %v760_v22 = vsub.f32 %v724_v55, %v748_v18  ;;  %v750_v61 = vmul.f32 %v2217_v1, %v1996_v47  ;;  %v727_v47 = vld [vmem:[%s2236_s17 + $0x18] sm:$0xff]  ;;  %v1336_v55 = vld [vmem:[%s1642_s10 + $0x48] sm:$0xff] }
 0x195   : > { %v1310_v4 = vpop.eup %1309 }
 0x196   : > { %1313 = vrsqrt.f32 %v690_v21  ;;  %v627_v0 = vpop.xlane.xlu0 %626  ;;  %v2221_v6 = vmul.f32 %v1310_v4, %v714_v25  ;;  %v749_v4 = vmul.f32 %v2213_v45, %v2030_v12  ;;  %v726_v25 = vld [vmem:[%s2236_s17 + $0x10] sm:$0xff] }
 0x197   : > { %784 = vperm.xlu1 %1302, %v2217_v1   ;;  %v679_v5 = vmul.f32 0.0012755102, %v627_v0  ;;  %v725_v0 = vld [vmem:[%s2236_s17 + $0x8] sm:$0xff]  ;;  %v762_v13 = vsub.f32 %v726_v25, %v750_v61  ;;  %v1338_v61 = vld [vmem:[%s1642_s10 + $0x58] sm:$0xff] }
 0x199   : > { %v691_v30 = vadd.f32 1e-05, %v679_v5 }
 0x19b   : > { %v1312_v26 = vpop.eup %1311  ;;  %789 = vperm.xlu1 %1302, %v2221_v6   ;;  %1315 = vrsqrt.f32 %v691_v30  ;;  %v761_v30 = vsub.f32 %v725_v0, %v749_v4  ;;  %v1339_v4 = vld [vmem:[%s1642_s10 + $0x60] sm:$0xff]  ;;  %v1340_v0 = vld [vmem:[%s1642_s10 + $0x68] sm:$0xff] }
 0x19c   : > { %v636_v27 = vpop.xlane.xlu1 %635  ;;  %v740_v35 = vmul.f32 %v1312_v26, %v715_v40  ;;  %v751_v40 = vmul.f32 %v2221_v6, %v2028_v62  ;;  %v728_v26 = vld [vmem:[%s2236_s17 + $0x20] sm:$0xff] }
 0x19d   : > { %v680_v63 = vmul.f32 0.0012755102, %v636_v27 }
 0x19e   : > { %v752_v5 = vmul.f32 %v740_v35, %v2041_v41  ;;  %v763_v1 = vsub.f32 %v727_v47, %v751_v40  ;;  %v1342_v40 = vld [vmem:[%s1642_s10 + $0x78] sm:$0xff]  ;;  %v1343_v47 = vld [vmem:[%s1642_s10 + $0x80] sm:$0xff] }
 0x19f   : > { %v692_v3 = vadd.f32 1e-05, %v680_v63  ;;  %794 = vperm.xlu1 %1302, %v740_v35   ;;  %v730_v63 = vld [vmem:[%s2236_s17 + $0x30] sm:$0xff] }
 0x1a0   : > { %v1314_v51 = vpop.eup %1313  ;;  %v764_v12 = vsub.f32 %v728_v26, %v752_v5  ;;  %v1341_v5 = vld [vmem:[%s1642_s10 + $0x70] sm:$0xff] }
 0x1a1   : > { %1317 = vrsqrt.f32 %v692_v3  ;;  %v645_v7 = vpop.xlane.xlu0 %644  ;;  %v741_v37 = vmul.f32 %v1314_v51, %v716_v43  ;;  %v729_v43 = vld [vmem:[%s2236_s17 + $0x28] sm:$0xff]  ;;  %v732_v3 = vld [vmem:[%s2236_s17 + $0x40] sm:$0xff]  ;;  %v731_v51 = vld [vmem:[%s2236_s17 + $0x38] sm:$0xff] }
 0x1a2   : > { %v681_v16 = vmul.f32 0.0012755102, %v645_v7 }
 0x1a3   : > { %799 = vperm.xlu1 %1302, %v741_v37   ;;  %v753_v27 = vmul.f32 %v741_v37, %v2043_v57 }
 0x1a4   : > { %v693_v38 = vadd.f32 1e-05, %v681_v16  ;;  %v734_v16 = vld [vmem:[%s2236_s17 + $0x50] sm:$0xff] }
 0x1a5   : > { %v1316_v52 = vpop.eup %1315  ;;  %v765_v6 = vsub.f32 %v729_v43, %v753_v27  ;;  %v1345_v27 = vld [vmem:[%s1642_s10 + $0x90] sm:$0xff]  ;;  %v1346_v43 = vld [vmem:[%s1642_s10 + $0x98] sm:$0xff] }
 0x1a6   : > { %1319 = vrsqrt.f32 %v693_v38  ;;  %v654_v32 = vpop.xlane.xlu1 %653  ;;  %v742_v39 = vmul.f32 %v1316_v52, %v717_v19  ;;  %v733_v38 = vld [vmem:[%s2236_s17 + $0x48] sm:$0xff]  ;;  %v735_v52 = vld [vmem:[%s2236_s17 + $0x58] sm:$0xff] }
 0x1a7   : > { %v682_v33 = vmul.f32 0.0012755102, %v654_v32 }
 0x1a8   : > { %804 = vperm.xlu1 %1302, %v742_v39   ;;  %v754_v45 = vmul.f32 %v742_v39, %v2049_v9 }
 0x1a9   : > { %v694_v44 = vadd.f32 1e-05, %v682_v33 }
 0x1aa   : > { %v766_v41 = vsub.f32 %v730_v63, %v754_v45  ;;  %v1344_v45 = vld [vmem:[%s1642_s10 + $0x88] sm:$0xff] }
 0x1ab   : > { %v1318_v54 = vpop.eup %1317  ;;  %1321 = vrsqrt.f32 %v694_v44  ;;  %v663_v42 = vpop.xlane.xlu0 %662 }
 0x1ac   : > { %v743_v29 = vmul.f32 %v1318_v54, %v718_v49  ;;  %v683_v60 = vmul.f32 0.0012755102, %v663_v42  ;;  %v1327_v42 = vld [vmem:[%s1642_s10] sm:$0xff] }
 0x1ae   : > { %809 = vperm.xlu1 %1302, %v743_v29   ;;  %v695_v20 = vadd.f32 1e-05, %v683_v60  ;;  %v755_v35 = vmul.f32 %v743_v29, %v2062_v53  ;;  %v1328_v60 = vld [vmem:[%s1642_s10 + $0x8] sm:$0xff] }
 0x1b0   : > { %v1320_v11 = vpop.eup %1319  ;;  %1323 = vrsqrt.f32 %v695_v20  ;;  %v672_v14 = vpop.xlane.xlu1 %671  ;;  %v767_v7 = vsub.f32 %v731_v51, %v755_v35  ;;  %v1329_v20 = vld [vmem:[%s1642_s10 + $0x10] sm:$0xff]  ;;  %v1348_v35 = vld [vmem:[%s1642_s10 + $0xa8] sm:$0xff] }
 0x1b1   : > { %v744_v23 = vmul.f32 %v1320_v11, %v719_v59  ;;  %v684_v10 = vmul.f32 0.0012755102, %v672_v14  ;;  %v1330_v14 = vld [vmem:[%s1642_s10 + $0x18] sm:$0xff] }
 0x1b3   : > { %814 = vperm.xlu1 %1302, %v744_v23   ;;  %v696_v24 = vadd.f32 1e-05, %v684_v10  ;;  %v756_v62 = vmul.f32 %v744_v23, %v2069_v15  ;;  %v1331_v10 = vld [vmem:[%s1642_s10 + $0x20] sm:$0xff] }
 0x1b5   : > { %v1322_v28 = vpop.eup %1321  ;;  %1325 = vrsqrt.f32 %v696_v24  ;;  %v768_v9 = vsub.f32 %v732_v3, %v756_v62  ;;  %v1332_v24 = vld [vmem:[%s1642_s10 + $0x28] sm:$0xff]  ;;  %v1347_v62 = vld [vmem:[%s1642_s10 + $0xa0] sm:$0xff] }
 0x1b6   : > { %v745_v31 = vmul.f32 %v1322_v28, %v720_v48 }
 0x1b8   : > { %819 = vperm.xlu0 %1301, %v745_v31   ;;  %v757_v37 = vmul.f32 %v745_v31, %v2073_v2  ;;  %v1333_v31 = vld [vmem:[%s1642_s10 + $0x30] sm:$0xff] }
 0x1ba   : > { %v1324_v58 = vpop.eup %1323  ;;  %v769_v15 = vsub.f32 %v733_v38, %v757_v37 }
 0x1bb   : > { %v746_v17 = vmul.f32 %v1324_v58, %v721_v50  ;;  %v1334_v58 = vld [vmem:[%s1642_s10 + $0x38] sm:$0xff] }
 0x1bd   : > { %824 = vperm.xlu1 %1302, %v746_v17   ;;  %v758_v57 = vmul.f32 %v746_v17, %v2083_v36 }
 0x1bf   : > { %v1326_v56 = vpop.eup %1325  ;;  %v770_v19 = vsub.f32 %v734_v16, %v758_v57  ;;  %v1351_v16 = vld [vmem:[%s1642_s10 + $0xc0] sm:$0xff] }
 0x1c0   : > { %v747_v21 = vmul.f32 %v1326_v56, %v722_v8  ;;  %v1337_v56 = vld [vmem:[%s1642_s10 + $0x50] sm:$0xff] }
 0x1c1   : > { %918 = vperm.xlu1 %1302, %v760_v22  }
 0x1c2   : > { %829 = vperm.xlu0 %1301, %v747_v21   ;;  %v759_v53 = vmul.f32 %v747_v21, %v2121_v34 }
 0x1c4   : > { %v771_v32 = vsub.f32 %v735_v52, %v759_v53  ;;  %v1353_v53 = vld [vmem:[%s1642_s10 + $0xd0] sm:$0xff] }
 0x1c5   : > { %928 = vperm.xlu1 %1302, %v762_v13  }
 0x1c6   : > { %923 = vperm.xlu0 %1301, %v761_v30  }
 0x1c9   : > { %938 = vperm.xlu1 %1302, %v764_v12  }
 0x1ca   : > { %933 = vperm.xlu0 %1301, %v763_v1  }
 0x1cd   : > { %948 = vperm.xlu1 %1302, %v766_v41  }
 0x1ce   : > { %943 = vperm.xlu0 %1301, %v765_v6  }
 0x1d1   : > { %958 = vperm.xlu1 %1302, %v768_v9   ;;  %v1349_v9 = vld [vmem:[%s1642_s10 + $0xb0] sm:$0xff] }
 0x1d2   : > { %953 = vperm.xlu0 %1301, %v767_v7   ;;  %v1350_v7 = vld [vmem:[%s1642_s10 + $0xb8] sm:$0xff] }
 0x1d5   : > { %968 = vperm.xlu1 %1302, %v770_v19   ;;  %v1352_v19 = vld [vmem:[%s1642_s10 + $0xc8] sm:$0xff] }
 0x1d6   : > { %963 = vperm.xlu0 %1301, %v769_v15  }
 0x1da   : > { %973 = vperm.xlu0 %1301, %v771_v32   ;;  %v1354_v32 = vld [vmem:[%s1642_s10 + $0xd8] sm:$0xff] }
 0x209   : > { %v775_v34 = vpop.permute.xlu0 %774 }
 0x20a   : > { %v2276_v29 = vmul.f32 %v1327_v42, %v775_v34  ;;  %v2279_v59 = vmul.f32 %v1328_v60, %v775_v34  ;;  %v2282_v11 = vmul.f32 %v1329_v20, %v775_v34  ;;  %v2285_v23 = vmul.f32 %v1330_v14, %v775_v34  ;;  %v1356_v42 = vld [vmem:[%s1642_s10 + $0xe8] sm:$0xff]  ;;  %v1357_v20 = vld [vmem:[%s1642_s10 + $0xf0] sm:$0xff] }
 0x20b   : > { %v2288_v48 = vmul.f32 %v1331_v10, %v775_v34  ;;  %v2291_v28 = vmul.f32 %v1332_v24, %v775_v34  ;;  %v2294_v50 = vmul.f32 %v1333_v31, %v775_v34  ;;  %v1358_v10 = vld [vmem:[%s1642_s10 + $0xf8] sm:$0xff]  ;;  %v1359_v24 = vld [vmem:[%s1642_s10 + $0x100] sm:$0xff] }
 0x212   : > { %v780_v36 = vpop.permute.xlu1 %779 }
 0x213   : > { %v2297_v17 = vmul.f32 %v1334_v58, %v780_v36  ;;  %v2300_v18 = vmul.f32 %v1335_v46, %v780_v36  ;;  %v2303_v8 = vmul.f32 %v1336_v55, %v780_v36  ;;  %v2306_v22 = vmul.f32 %v1337_v56, %v780_v36  ;;  %v1360_v58 = vld [vmem:[%s1642_s10 + $0x108] sm:$0xff]  ;;  %v1361_v55 = vld [vmem:[%s1642_s10 + $0x110] sm:$0xff] }
 0x214   : > { %v2309_v21 = vmul.f32 %v1338_v61, %v780_v36  ;;  %v2312_v25 = vmul.f32 %v1339_v4, %v780_v36  ;;  %v2315_v13 = vmul.f32 %v1340_v0, %v780_v36  ;;  %v1362_v61 = vld [vmem:[%s1642_s10 + $0x118] sm:$0xff]  ;;  %v1363_v0 = vld [vmem:[%s1642_s10 + $0x120] sm:$0xff] }
 0x216   : > { %v785_v2 = vpop.permute.xlu1 %784 }
 0x217   : > { %v2318_v30 = vmul.f32 %v1341_v5, %v785_v2  ;;  %v2321_v26 = vmul.f32 %v1342_v40, %v785_v2  ;;  %v2324_v12 = vmul.f32 %v1343_v47, %v785_v2  ;;  %v2327_v1 = vmul.f32 %v1344_v45, %v785_v2  ;;  %v1364_v40 = vld [vmem:[%s1642_s10 + $0x128] sm:$0xff]  ;;  %v1365_v45 = vld [vmem:[%s1642_s10 + $0x130] sm:$0xff] }
 0x218   : > { %v2330_v63 = vmul.f32 %v1345_v27, %v785_v2  ;;  %v2333_v41 = vmul.f32 %v1346_v43, %v785_v2  ;;  %v2336_v6 = vmul.f32 %v1347_v62, %v785_v2  ;;  %v1355_v2 = vld [vmem:[%s1642_s10 + $0xe0] sm:$0xff]  ;;  %v1366_v27 = vld [vmem:[%s1642_s10 + $0x138] sm:$0xff] }
 0x219   : > { %v1367_v62 = vld [vmem:[%s1642_s10 + $0x140] sm:$0xff] }
 0x21a   : > { %v790_v33 = vpop.permute.xlu1 %789 }
 0x21b   : > { %v2339_v3 = vmul.f32 %v1348_v35, %v790_v33  ;;  %v2344_v57 = vmul.f32 %v1349_v9, %v790_v33  ;;  %v2347_v37 = vmul.f32 %v1350_v7, %v790_v33  ;;  %v2350_v38 = vmul.f32 %v1351_v16, %v790_v33  ;;  %v1368_v9 = vld [vmem:[%s1642_s10 + $0x148] sm:$0xff] }
 0x21c   : > { %v2353_v15 = vmul.f32 %v1352_v19, %v790_v33  ;;  %v2356_v52 = vmul.f32 %v1353_v53, %v790_v33  ;;  %v2359_v36 = vmul.f32 %v1354_v32, %v790_v33  ;;  %v1369_v19 = vld [vmem:[%s1642_s10 + $0x150] sm:$0xff]  ;;  %v1370_v32 = vld [vmem:[%s1642_s10 + $0x158] sm:$0xff] }
 0x21e   : > { %v2267_v39 = vpop.permute.xlu1 %794 }
 0x21f   : > { %v2363_v34 = vmul.f32 %v1355_v2, %v2267_v39  ;;  %v2367_v60 = vmul.f32 %v1356_v42, %v2267_v39  ;;  %v2371_v14 = vmul.f32 %v1357_v20, %v2267_v39  ;;  %v2375_v33 = vmul.f32 %v1358_v10, %v2267_v39  ;;  %v1371_v42 = vld [vmem:[%s1642_s10 + $0x160] sm:$0xff] }
 0x220   : > { %v2379_v31 = vmul.f32 %v1359_v24, %v2267_v39  ;;  %v2383_v46 = vmul.f32 %v1360_v58, %v2267_v39  ;;  %v2387_v56 = vmul.f32 %v1361_v55, %v2267_v39  ;;  %v1373_v58 = vld [vmem:[%s1642_s10 + $0x170] sm:$0xff] }
 0x222   : > { %v2269_v44 = vpop.permute.xlu1 %799 }
 0x223   : > { %v2391_v4 = vmul.f32 %v1362_v61, %v2269_v44  ;;  %v2395_v5 = vmul.f32 %v1363_v0, %v2269_v44  ;;  %v2399_v47 = vmul.f32 %v1364_v40, %v2269_v44  ;;  %v2403_v39 = vmul.f32 %v1365_v45, %v2269_v44  ;;  %v1374_v61 = vld [vmem:[%s1642_s10 + $0x178] sm:$0xff]  ;;  %v1375_v40 = vld [vmem:[%s1642_s10 + $0x180] sm:$0xff] }
 0x224   : > { %v2407_v43 = vmul.f32 %v1366_v27, %v2269_v44  ;;  %v2411_v35 = vmul.f32 %v1367_v62, %v2269_v44  ;;  %v2415_v7 = vmul.f32 %v1368_v9, %v2269_v44  ;;  %v1372_v44 = vld [vmem:[%s1642_s10 + $0x168] sm:$0xff]  ;;  %v1377_v9 = vld [vmem:[%s1642_s10 + $0x190] sm:$0xff] }
 0x225   : > { %v1376_v27 = vld [vmem:[%s1642_s10 + $0x188] sm:$0xff] }
 0x227   : > { %v2271_v49 = vpop.permute.xlu1 %804 }
 0x228   : > { %v2421_v53 = vmul.f32 %v1369_v19, %v2271_v49  ;;  %v2425_v2 = vmul.f32 %v1370_v32, %v2271_v49  ;;  %v2429_v20 = vmul.f32 %v1371_v42, %v2271_v49  ;;  %v2433_v10 = vmul.f32 %v1372_v44, %v2271_v49  ;;  %v1378_v32 = vld [vmem:[%s1642_s10 + $0x198] sm:$0xff]  ;;  %v1379_v44 = vld [vmem:[%s1642_s10 + $0x1a0] sm:$0xff] }
 0x229   : > { %v2439_v55 = vmul.f32 %v1373_v58, %v2271_v49  ;;  %v2443_v0 = vmul.f32 %v1374_v61, %v2271_v49  ;;  %v2447_v45 = vmul.f32 %v1375_v40, %v2271_v49  ;;  %v1380_v58 = vld [vmem:[%s1642_s10 + $0x1a8] sm:$0xff]  ;;  %v1381_v40 = vld [vmem:[%s1642_s10 + $0x1b0] sm:$0xff] }
 0x22d   : > { %v2273_v54 = vpop.permute.xlu1 %809 }
 0x22e   : > { %v2451_v62 = vmul.f32 %v1376_v27, %v2273_v54  ;;  %v2455_v19 = vmul.f32 %v1377_v9, %v2273_v54  ;;  %v2459_v42 = vmul.f32 %v1378_v32, %v2273_v54  ;;  %v2463_v49 = vmul.f32 %v1379_v44, %v2273_v54  ;;  %v1382_v9 = vld [vmem:[%s1642_s10 + $0x1b8] sm:$0xff]  ;;  %v1383_v32 = vld [vmem:[%s1642_s10 + $0x1c0] sm:$0xff] }
 0x22f   : > { %v2467_v61 = vmul.f32 %v1380_v58, %v2273_v54  ;;  %v2471_v27 = vmul.f32 %v1381_v40, %v2273_v54 }
 0x230   : > { %2941 = vst [vmem:[#allocation11_spill] sm:$0xff] %v2451_v62  ;;  %2942 = vst [vmem:[#allocation12_spill] sm:$0xff] %v2455_v19  ;;  %v2475_v19 = vmul.f32 %v1382_v9, %v2273_v54  ;;  %v1384_v62 = vld [vmem:[%s1642_s10 + $0x1c8] sm:$0xff]  ;;  %v1387_v54 = vld [vmem:[%s1642_s10 + $0x1e0] sm:$0xff] }
 0x231   : > { %2943 = vst [vmem:[#allocation16_spill] sm:$0xff] %v2459_v42  ;;  %2944 = vst [vmem:[#allocation8_spill] sm:$0xff] %v2463_v49  ;;  %v1385_v49 = vld [vmem:[%s1642_s10 + $0x1d0] sm:$0xff] }
 0x232   : > { %v2341_v51 = vpop.permute.xlu1 %814  ;;  %2945 = vst [vmem:[#allocation9_spill] sm:$0xff] %v2467_v61  ;;  %2946 = vst [vmem:[#allocation10_spill] sm:$0xff] %v2471_v27  ;;  %v1386_v61 = vld [vmem:[%s1642_s10 + $0x1d8] sm:$0xff] }
 0x233   : > { %2947 = vst [vmem:[#allocation13_spill] sm:$0xff] %v2475_v19  ;;  %v2479_v42 = vmul.f32 %v1383_v32, %v2341_v51  ;;  %v2483_v44 = vmul.f32 %v1384_v62, %v2341_v51  ;;  %v2487_v58 = vmul.f32 %v1385_v49, %v2341_v51  ;;  %v2491_v40 = vmul.f32 %v1386_v61, %v2341_v51  ;;  %v1388_v32 = vld [vmem:[%s1642_s10 + $0x1e8] sm:$0xff] }
 0x234   : > { %v2495_v9 = vmul.f32 %v1387_v54, %v2341_v51  ;;  %v2499_v19 = vmul.f32 %v1388_v32, %v2341_v51 }
 0x235   : > { %2948 = vst [vmem:[#allocation17_spill] sm:$0xff] %v2483_v44  ;;  %2949 = vst [vmem:[#allocation22_spill] sm:$0xff] %v2487_v58  ;;  %v1392_v44 = vld [vmem:[%s1642_s10 + $0x208] sm:$0xff] }
 0x236   : > { %2950 = vst [vmem:[#allocation19_spill] sm:$0xff] %v2491_v40  ;;  %2951 = vst [vmem:[#allocation14_spill] sm:$0xff] %v2495_v9  ;;  %v1389_v9 = vld [vmem:[%s1642_s10 + $0x1f0] sm:$0xff] }
 0x237   : > { %v2417_v16 = vpop.permute.xlu0 %819  ;;  %2952 = vst [vmem:[#allocation15_spill] sm:$0xff] %v2499_v19  ;;  %v2509_v58 = vmul.f32 %v1389_v9, %v2341_v51 }
 0x238   : > { %v2524_v51 = vmul.f32 %v1392_v44, %v2417_v16  ;;  %v1395_v44 = vld [vmem:[%s1642_s10 + $0x220] sm:$0xff] }
 0x23c   : > { %v2435_v24 = vpop.permute.xlu1 %824 }
 0x240   : > { %v919_v62 = vpop.permute.xlu1 %918 }
 0x241   : > { %v2501_v27 = vpop.permute.xlu0 %829  ;;  %v976_v49 = vadd.f32 %v919_v62, %v2276_v29  ;;  %v977_v61 = vadd.f32 %v919_v62, %v2279_v59  ;;  %v978_v40 = vadd.f32 %v919_v62, %v2282_v11  ;;  %v979_v54 = vadd.f32 %v919_v62, %v2285_v23  ;;  %v1390_v29 = vld [vmem:[%s1642_s10 + $0x1f8] sm:$0xff]  ;;  %v1391_v11 = vld [vmem:[%s1642_s10 + $0x200] sm:$0xff] }
 0x242   : > { %2953 = vst [vmem:[#allocation18_spill] sm:$0xff] %v2501_v27  ;;  %v980_v32 = vadd.f32 %v919_v62, %v2288_v48  ;;  %v981_v19 = vadd.f32 %v919_v62, %v2291_v28  ;;  %v982_v27 = vadd.f32 %v919_v62, %v2294_v50  ;;  %v2516_v59 = vmul.f32 %v1390_v29, %v2417_v16  ;;  %v1393_v48 = vld [vmem:[%s1642_s10 + $0x210] sm:$0xff]  ;;  %v1394_v28 = vld [vmem:[%s1642_s10 + $0x218] sm:$0xff]  ;;  %v1396_v29 = vld [vmem:[%s1642_s10 + $0x228] sm:$0xff] }
 0x243   : > { %v2520_v23 = vmul.f32 %v1391_v11, %v2417_v16  ;;  %v2528_v9 = vmul.f32 %v1393_v48, %v2417_v16  ;;  %1060 = vst [vmem:[%s2532_s19] sm:$0xff] %v976_v49  ;;  %1061 = vst [vmem:[%s2532_s19 + $0x8] sm:$0xff] %v977_v61  ;;  %v2540_v50 = vmul.f32 %v1394_v28, %v2417_v16 }
 0x244   : > { %1062 = vst [vmem:[%s2532_s19 + $0x10] sm:$0xff] %v978_v40  ;;  %1063 = vst [vmem:[%s2532_s19 + $0x18] sm:$0xff] %v979_v54  ;;  %v2544_v62 = vmul.f32 %v1395_v44, %v2417_v16  ;;  %v2548_v11 = vmul.f32 %v1396_v29, %v2417_v16  ;;  %v929_v49 = vpop.permute.xlu1 %928  ;;  %v1397_v40 = vld [vmem:[%s1642_s10 + $0x230] sm:$0xff] }
 0x245   : > { %1064 = vst [vmem:[%s2532_s19 + $0x20] sm:$0xff] %v980_v32  ;;  %1065 = vst [vmem:[%s2532_s19 + $0x28] sm:$0xff] %v981_v19  ;;  %v2556_v61 = vmul.f32 %v1397_v40, %v2435_v24  ;;  %v924_v54 = vpop.permute.xlu0 %923  ;;  %v990_v48 = vadd.f32 %v929_v49, %v2318_v30  ;;  %v991_v16 = vadd.f32 %v929_v49, %v2321_v26 }
 0x246   : > { %1066 = vst.msk [vmem:[%s2532_s19 + $0x30] sm:$0xff] %vm281_vm0, %v982_v27  ;;  %v992_v19 = vadd.f32 %v929_v49, %v2324_v12  ;;  %v993_v27 = vadd.f32 %v929_v49, %v2327_v1  ;;  %v983_v32 = vadd.f32 %v924_v54, %v2297_v17  ;;  %v984_v28 = vadd.f32 %v924_v54, %v2300_v18 }
 0x247   : > { %v985_v44 = vadd.f32 %v924_v54, %v2303_v8  ;;  %v986_v29 = vadd.f32 %v924_v54, %v2306_v22  ;;  %v987_v30 = vadd.f32 %v924_v54, %v2309_v21  ;;  %v988_v26 = vadd.f32 %v924_v54, %v2312_v25  ;;  %1074 = vst [vmem:[%s2532_s19 + $0x70] sm:$0xff] %v990_v48  ;;  %v1398_v22 = vld [vmem:[%s1642_s10 + $0x238] sm:$0xff]  ;;  %v1399_v25 = vld [vmem:[%s1642_s10 + $0x240] sm:$0xff] }
 0x248   : > { %v989_v12 = vadd.f32 %v924_v54, %v2315_v13  ;;  %v994_v40 = vadd.f32 %v929_v49, %v2330_v63  ;;  %1075 = vst [vmem:[%s2532_s19 + $0x78] sm:$0xff] %v991_v16  ;;  %1076 = vst [vmem:[%s2532_s19 + $0x80] sm:$0xff] %v992_v19  ;;  %v995_v17 = vadd.f32 %v929_v49, %v2333_v41  ;;  %v939_v8 = vpop.permute.xlu1 %938 }
 0x249   : > { %1077 = vst [vmem:[%s2532_s19 + $0x88] sm:$0xff] %v993_v27  ;;  %1067 = vst [vmem:[%s2532_s19 + $0x38] sm:$0xff] %v983_v32  ;;  %v996_v18 = vadd.f32 %v929_v49, %v2336_v6  ;;  %v2582_v21 = vmul.f32 %v1398_v22, %v2435_v24  ;;  %v2586_v13 = vmul.f32 %v1399_v25, %v2435_v24  ;;  %v934_v1 = vpop.permute.xlu0 %933  ;;  %v2958_v22 = vld [vmem:[#allocation12_spill] sm:$0xff] }
 0x24a   : > { %1068 = vst [vmem:[%s2532_s19 + $0x40] sm:$0xff] %v984_v28  ;;  %1069 = vst [vmem:[%s2532_s19 + $0x48] sm:$0xff] %v985_v44  ;;  %v1004_v63 = vadd.f32 %v939_v8, %v2363_v34  ;;  %v1005_v41 = vadd.f32 %v939_v8, %v2367_v60  ;;  %v1006_v6 = vadd.f32 %v939_v8, %v2371_v14 }
 0x24b   : > { %1070 = vst [vmem:[%s2532_s19 + $0x50] sm:$0xff] %v986_v29  ;;  %1071 = vst [vmem:[%s2532_s19 + $0x58] sm:$0xff] %v987_v30  ;;  %v1007_v49 = vadd.f32 %v939_v8, %v2375_v33  ;;  %v997_v54 = vadd.f32 %v934_v1, %v2339_v3  ;;  %v998_v48 = vadd.f32 %v934_v1, %v2344_v57 }
 0x24c   : > { %1072 = vst [vmem:[%s2532_s19 + $0x60] sm:$0xff] %v988_v26  ;;  %1073 = vst.msk [vmem:[%s2532_s19 + $0x68] sm:$0xff] %vm281_vm0, %v989_v12  ;;  %v999_v16 = vadd.f32 %v934_v1, %v2347_v37  ;;  %v1000_v34 = vadd.f32 %v934_v1, %v2350_v38  ;;  %v1001_v60 = vadd.f32 %v934_v1, %v2353_v15  ;;  %v949_v38 = vpop.permute.xlu1 %948  ;;  %v1400_v15 = vld [vmem:[%s1642_s10 + $0x248] sm:$0xff]  ;;  %v2955_v12 = vld [vmem:[#allocation22_spill] sm:$0xff] }
 0x24d   : > { %1078 = vst [vmem:[%s2532_s19 + $0x90] sm:$0xff] %v994_v40  ;;  %1079 = vst [vmem:[%s2532_s19 + $0x98] sm:$0xff] %v995_v17  ;;  %v1002_v14 = vadd.f32 %v934_v1, %v2356_v52  ;;  %v1003_v33 = vadd.f32 %v934_v1, %v2359_v36  ;;  %v1008_v3 = vadd.f32 %v939_v8, %v2379_v31  ;;  %v1401_v36 = vld [vmem:[%s1642_s10 + $0x250] sm:$0xff]  ;;  %v944_v19 = vpop.permute.xlu0 %943  ;;  %v2956_v17 = vld [vmem:[#allocation19_spill] sm:$0xff] }
 0x24e   : > { %1080 = vst.msk [vmem:[%s2532_s19 + $0xa0] sm:$0xff] %vm281_vm0, %v996_v18  ;;  %1088 = vst [vmem:[%s2532_s19 + $0xe0] sm:$0xff] %v1004_v63  ;;  %v1009_v57 = vadd.f32 %v939_v8, %v2383_v46  ;;  %v1010_v37 = vadd.f32 %v939_v8, %v2387_v56  ;;  %v2620_v52 = vmul.f32 %v1400_v15, %v2435_v24  ;;  %v2957_v18 = vld [vmem:[#allocation11_spill] sm:$0xff]  ;;  %v2959_v1 = vld [vmem:[#allocation16_spill] sm:$0xff] }
 0x24f   : > { %1089 = vst [vmem:[%s2532_s19 + $0xe8] sm:$0xff] %v1005_v41  ;;  %1090 = vst [vmem:[%s2532_s19 + $0xf0] sm:$0xff] %v1006_v6  ;;  %v2624_v31 = vmul.f32 %v1401_v36, %v2435_v24  ;;  %v1018_v46 = vadd.f32 %v949_v38, %v2421_v53  ;;  %v1019_v56 = vadd.f32 %v949_v38, %v2425_v2  ;;  %v2960_v41 = vld [vmem:[#allocation8_spill] sm:$0xff]  ;;  %v2961_v6 = vld [vmem:[#allocation9_spill] sm:$0xff] }
 0x250   : > { %1091 = vst [vmem:[%s2532_s19 + $0xf8] sm:$0xff] %v1007_v49  ;;  %1081 = vst [vmem:[%s2532_s19 + $0xa8] sm:$0xff] %v997_v54  ;;  %v1020_v27 = vadd.f32 %v949_v38, %v2429_v20  ;;  %v1021_v32 = vadd.f32 %v949_v38, %v2433_v10  ;;  %v1011_v28 = vadd.f32 %v944_v19, %v2391_v4  ;;  %v2962_v54 = vld [vmem:[#allocation10_spill] sm:$0xff]  ;;  %v2966_v15 = vld [vmem:[#allocation15_spill] sm:$0xff] }
 0x251   : > { %1082 = vst [vmem:[%s2532_s19 + $0xb0] sm:$0xff] %v998_v48  ;;  %1083 = vst [vmem:[%s2532_s19 + $0xb8] sm:$0xff] %v999_v16  ;;  %v1012_v44 = vadd.f32 %v944_v19, %v2395_v5  ;;  %v1013_v29 = vadd.f32 %v944_v19, %v2399_v47  ;;  %v1014_v53 = vadd.f32 %v944_v19, %v2403_v39  ;;  %v959_v39 = vpop.permute.xlu1 %958  ;;  %v954_v30 = vpop.permute.xlu0 %953  ;;  %v2963_v16 = vld [vmem:[#allocation13_spill] sm:$0xff] }
 0x252   : > { %1084 = vst [vmem:[%s2532_s19 + $0xc0] sm:$0xff] %v1000_v34  ;;  %1085 = vst [vmem:[%s2532_s19 + $0xc8] sm:$0xff] %v1001_v60  ;;  %v1015_v2 = vadd.f32 %v944_v19, %v2407_v43  ;;  %v1016_v20 = vadd.f32 %v944_v19, %v2411_v35  ;;  %v1017_v10 = vadd.f32 %v944_v19, %v2415_v7  ;;  %v1402_v43 = vld [vmem:[%s1642_s10 + $0x258] sm:$0xff]  ;;  %v1403_v7 = vld [vmem:[%s1642_s10 + $0x260] sm:$0xff] }
 0x253   : > { %1086 = vst [vmem:[%s2532_s19 + $0xd0] sm:$0xff] %v1002_v14  ;;  %1087 = vst.msk [vmem:[%s2532_s19 + $0xd8] sm:$0xff] %vm281_vm0, %v1003_v33  ;;  %v1022_v4 = vadd.f32 %v949_v38, %v2439_v55  ;;  %v1023_v5 = vadd.f32 %v949_v38, %v2443_v0  ;;  %v1024_v47 = vadd.f32 %v949_v38, %v2447_v45  ;;  %v2954_v45 = vld [vmem:[#allocation17_spill] sm:$0xff]  ;;  %v2964_v60 = vld [vmem:[#allocation14_spill] sm:$0xff] }
 0x254   : > { %1092 = vst [vmem:[%s2532_s19 + $0x100] sm:$0xff] %v1008_v3  ;;  %1093 = vst [vmem:[%s2532_s19 + $0x108] sm:$0xff] %v1009_v57  ;;  %v2658_v35 = vmul.f32 %v1402_v43, %v2435_v24  ;;  %v2662_v55 = vmul.f32 %v1403_v7, %v2435_v24  ;;  %v1032_v0 = vadd.f32 %v959_v39, %v2479_v42  ;;  %v1404_v33 = vld [vmem:[%s1642_s10 + $0x268] sm:$0xff]  ;;  %v2965_v3 = vld [vmem:[#allocation18_spill] sm:$0xff] }
 0x255   : > { %1094 = vst.msk [vmem:[%s2532_s19 + $0x110] sm:$0xff] %vm281_vm0, %v1010_v37  ;;  %1102 = vst [vmem:[%s2532_s19 + $0x150] sm:$0xff] %v1018_v46  ;;  %v1033_v26 = vadd.f32 %v959_v39, %v2954_v45  ;;  %v1034_v40 = vadd.f32 %v959_v39, %v2955_v12  ;;  %v1035_v24 = vadd.f32 %v959_v39, %v2956_v17  ;;  %v1405_v37 = vld [vmem:[%s1642_s10 + $0x270] sm:$0xff]  ;;  %v969_v46 = vpop.permute.xlu1 %968 }
 0x256   : > { %1103 = vst [vmem:[%s2532_s19 + $0x158] sm:$0xff] %v1019_v56  ;;  %1104 = vst [vmem:[%s2532_s19 + $0x160] sm:$0xff] %v1020_v27  ;;  %v1025_v8 = vadd.f32 %v954_v30, %v2957_v18  ;;  %v1026_v25 = vadd.f32 %v954_v30, %v2958_v22  ;;  %v1027_v63 = vadd.f32 %v954_v30, %v2959_v1  ;;  %v964_v56 = vpop.permute.xlu0 %963 }
 0x257   : > { %1105 = vst [vmem:[%s2532_s19 + $0x168] sm:$0xff] %v1021_v32  ;;  %1095 = vst [vmem:[%s2532_s19 + $0x118] sm:$0xff] %v1011_v28  ;;  %v1028_v42 = vadd.f32 %v954_v30, %v2960_v41  ;;  %v1029_v49 = vadd.f32 %v954_v30, %v2961_v6  ;;  %v1030_v48 = vadd.f32 %v954_v30, %v2962_v54 }
 0x258   : > { %1096 = vst [vmem:[%s2532_s19 + $0x120] sm:$0xff] %v1012_v44  ;;  %1097 = vst [vmem:[%s2532_s19 + $0x128] sm:$0xff] %v1013_v29  ;;  %v1031_v34 = vadd.f32 %v954_v30, %v2963_v16  ;;  %v1036_v14 = vadd.f32 %v959_v39, %v2964_v60  ;;  %v909_v57 = vmul.f32 %v1404_v33, %v2965_v3 }
 0x259   : > { %1098 = vst [vmem:[%s2532_s19 + $0x130] sm:$0xff] %v1014_v53  ;;  %1099 = vst [vmem:[%s2532_s19 + $0x138] sm:$0xff] %v1015_v2  ;;  %v910_v38 = vmul.f32 %v1405_v37, %v2965_v3  ;;  %v1037_v36 = vadd.f32 %v959_v39, %v2966_v15  ;;  %v1038_v19 = vadd.f32 %v959_v39, %v2509_v58 }
 0x25a   : > { %1100 = vst [vmem:[%s2532_s19 + $0x140] sm:$0xff] %v1016_v20  ;;  %1101 = vst.msk [vmem:[%s2532_s19 + $0x148] sm:$0xff] %vm281_vm0, %v1017_v10  ;;  %v1046_v27 = vadd.f32 %v969_v46, %v2556_v61  ;;  %v1047_v32 = vadd.f32 %v969_v46, %v2582_v21  ;;  %v1048_v28 = vadd.f32 %v969_v46, %v2586_v13  ;;  %v1409_v20 = vld [vmem:[%s1642_s10 + $0x290] sm:$0xff] }
 0x25b   : > { %1106 = vst [vmem:[%s2532_s19 + $0x170] sm:$0xff] %v1022_v4  ;;  %1107 = vst [vmem:[%s2532_s19 + $0x178] sm:$0xff] %v1023_v5  ;;  %v1049_v58 = vadd.f32 %v969_v46, %v2620_v52  ;;  %v1039_v44 = vadd.f32 %v964_v56, %v2516_v59  ;;  %v1040_v29 = vadd.f32 %v964_v56, %v2520_v23  ;;  %v1410_v4 = vld [vmem:[%s1642_s10 + $0x298] sm:$0xff] }
 0x25c   : > { %1108 = vst.msk [vmem:[%s2532_s19 + $0x180] sm:$0xff] %vm281_vm0, %v1024_v47  ;;  %1116 = vst [vmem:[%s2532_s19 + $0x1c0] sm:$0xff] %v1032_v0  ;;  %v1041_v53 = vadd.f32 %v964_v56, %v2524_v51  ;;  %v1042_v61 = vadd.f32 %v964_v56, %v2528_v9  ;;  %v1043_v21 = vadd.f32 %v964_v56, %v2540_v50  ;;  %v1406_v51 = vld [vmem:[%s1642_s10 + $0x278] sm:$0xff]  ;;  %v1407_v50 = vld [vmem:[%s1642_s10 + $0x280] sm:$0xff]  ;;  %v974_v47 = vpop.permute.xlu0 %973 }
 0x25d   : > { %1117 = vst [vmem:[%s2532_s19 + $0x1c8] sm:$0xff] %v1033_v26  ;;  %1118 = vst [vmem:[%s2532_s19 + $0x1d0] sm:$0xff] %v1034_v40  ;;  %v1044_v13 = vadd.f32 %v964_v56, %v2544_v62  ;;  %v1045_v59 = vadd.f32 %v964_v56, %v2548_v11  ;;  %v1050_v23 = vadd.f32 %v969_v46, %v2624_v31  ;;  %v1408_v31 = vld [vmem:[%s1642_s10 + $0x288] sm:$0xff]  ;;  %s1447_s10 = scalar_lea.vmem %s1446_s9, 21504 }
 0x25e   : > { %1119 = vst [vmem:[%s2532_s19 + $0x1d8] sm:$0xff] %v1035_v24  ;;  %1109 = vst [vmem:[%s2532_s19 + $0x188] sm:$0xff] %v1025_v8  ;;  %v911_v9 = vmul.f32 %v1406_v51, %v2965_v3  ;;  %v912_v62 = vmul.f32 %v1407_v50, %v2965_v3  ;;  %v1051_v11 = vadd.f32 %v969_v46, %v2658_v35  ;;  %p1449_p10 = scmp.lt.s32.totalorder %s1447_s10, %s1441_s30 }
 0x25f   : > { %1110 = vst [vmem:[%s2532_s19 + $0x190] sm:$0xff] %v1026_v25  ;;  %1111 = vst [vmem:[%s2532_s19 + $0x198] sm:$0xff] %v1027_v63  ;;  %v1052_v52 = vadd.f32 %v969_v46, %v2662_v55  ;;  %v913_v2 = vmul.f32 %v1408_v31, %v2965_v3  ;;  %v914_v10 = vmul.f32 %v1409_v20, %v2965_v3 }
 0x260   : > { %1112 = vst [vmem:[%s2532_s19 + $0x1a0] sm:$0xff] %v1028_v42  ;;  %1113 = vst [vmem:[%s2532_s19 + $0x1a8] sm:$0xff] %v1029_v49  ;;  %v915_v5 = vmul.f32 %v1410_v4, %v2965_v3  ;;  %v1053_v39 = vadd.f32 %v974_v47, %v909_v57  ;;  %v1054_v43 = vadd.f32 %v974_v47, %v910_v38  ;;  %p1450_p1 = por %p1449_p10, %p1448_p4 }
 0x261   : > { %1114 = vst [vmem:[%s2532_s19 + $0x1b0] sm:$0xff] %v1030_v48  ;;  %1115 = vst.msk [vmem:[%s2532_s19 + $0x1b8] sm:$0xff] %vm281_vm0, %v1031_v34  ;;  %v1055_v35 = vadd.f32 %v974_v47, %v911_v9  ;;  %v1056_v7 = vadd.f32 %v974_v47, %v912_v62  ;;  %v1057_v55 = vadd.f32 %v974_v47, %v913_v2 }
 0x262   : > { %1120 = vst [vmem:[%s2532_s19 + $0x1e0] sm:$0xff] %v1036_v14  ;;  %1121 = vst [vmem:[%s2532_s19 + $0x1e8] sm:$0xff] %v1037_v36  ;;  %v1058_v30 = vadd.f32 %v974_v47, %v914_v10  ;;  %v1059_v0 = vadd.f32 %v974_v47, %v915_v5  ;;  %p1451_p3 = pnand %p1450_p1, %p1444_p13 }
 0x263   : > { %1122 = vst.msk [vmem:[%s2532_s19 + $0x1f0] sm:$0xff] %vm281_vm0, %v1038_v19  ;;  %1130 = vst [vmem:[%s2532_s19 + $0x230] sm:$0xff] %v1046_v27 }
 0x264   : > { %1131 = vst [vmem:[%s2532_s19 + $0x238] sm:$0xff] %v1047_v32  ;;  %1132 = vst [vmem:[%s2532_s19 + $0x240] sm:$0xff] %v1048_v28 }
 0x265   : > { %1133 = vst [vmem:[%s2532_s19 + $0x248] sm:$0xff] %v1049_v58  ;;  %1123 = vst [vmem:[%s2532_s19 + $0x1f8] sm:$0xff] %v1039_v44 }
 0x266   : > { %1124 = vst [vmem:[%s2532_s19 + $0x200] sm:$0xff] %v1040_v29  ;;  %1125 = vst [vmem:[%s2532_s19 + $0x208] sm:$0xff] %v1041_v53 }
 0x267   : > { %1126 = vst [vmem:[%s2532_s19 + $0x210] sm:$0xff] %v1042_v61  ;;  %1127 = vst [vmem:[%s2532_s19 + $0x218] sm:$0xff] %v1043_v21 }
 0x268   : > { %1128 = vst [vmem:[%s2532_s19 + $0x220] sm:$0xff] %v1044_v13  ;;  %1129 = vst.msk [vmem:[%s2532_s19 + $0x228] sm:$0xff] %vm281_vm0, %v1045_v59 }
 0x269   : > { %1134 = vst [vmem:[%s2532_s19 + $0x250] sm:$0xff] %v1050_v23  ;;  %1135 = vst [vmem:[%s2532_s19 + $0x258] sm:$0xff] %v1051_v11 }
 0x26a   : > { %1136 = vst.msk [vmem:[%s2532_s19 + $0x260] sm:$0xff] %vm281_vm0, %v1052_v52  ;;  %1137 = vst [vmem:[%s2532_s19 + $0x268] sm:$0xff] %v1053_v39 }
 0x26b   : > { %1138 = vst [vmem:[%s2532_s19 + $0x270] sm:$0xff] %v1054_v43  ;;  %1139 = vst [vmem:[%s2532_s19 + $0x278] sm:$0xff] %v1055_v35 }
 0x26c   : > { %1140 = vst [vmem:[%s2532_s19 + $0x280] sm:$0xff] %v1056_v7  ;;  %1141 = vst [vmem:[%s2532_s19 + $0x288] sm:$0xff] %v1057_v55 }
 0x26d   : > { %1142 = vst [vmem:[%s2532_s19 + $0x290] sm:$0xff] %v1058_v30  ;;  %1143 = vst.msk [vmem:[%s2532_s19 + $0x298] sm:$0xff] %vm281_vm0, %v1059_v0 }
 0x26e   : > { %1454 = shalt.err (!%p1451_p3)
}
 0x26f   : > { %s1455_s22 = scalar_lea.hbm %s2753_s29, 10752  ;;  %s1459_s6 = scalar_lea.hbm %s2810_s3, 21504 }
 0x270   : > { %p1456_p5 = scmp.ne.s32.totalorder %s2753_s29, %s1455_s22  ;;  %p1460_p9 = scmp.lt.u32.totalorder %s2753_s29, %s2810_s3 }
 0x271   : > { %p1461_p0 = scmp.lt.u32.totalorder %s1459_s6, %s1455_s22  ;;  %p1463_p6 = scmp.lt.u32.totalorder %s1455_s22, %s2753_s29 }
 0x272   : > { %p1457_p7 = pnand %p1456_p5, %p2967_p11 }
 0x273   : > { %p1462_p2 = por %p1461_p0, %p1460_p9 }
 0x274   : > { %p1458_p8 = pneg %p1457_p7 }
 0x275   : > { %p1464_p12 = por %p1463_p6, %p1462_p2 }
 0x277   : > { %p1465_p13 = pnand %p1464_p12, %p1458_p8 }
 0x279   : > { %1468 = shalt.err (!%p1465_p13)
}
 0x27a   : > { %s1514_s17 = smov 896   ;;  %s1515_s19 = smov 56  }
 0x27b   : > { %1250 = dma.vmem_to_hbm [thread:$0]  (%p2967_p11), %s2755_s25, 10752, %s2753_s29, %s1145_s16, %s1514_s17, %s1514_s17, %s1515_s19  }
 0x27c PF: > { %s1174_s20 = sand.u32 1, %s1495_s12   ;;  %p2968_p4 = scmp.ne.s32.totalorder %s2856_s24, 0 }
 0x27d   : > { %p2969_p10 = scmp.ge.s32.totalorder %s1507_s15, 2  ;;  %s1175_s26 = scalar_lea.sflag [#allocation4], %s1174_s20 }
 0x27f   : > { %p1257_p1 = pnand %p2969_p10, %p2968_p4 }
 0x281   : > { %1490 = dma.done.wait (!%p1257_p1), %s1175_s26, 10752  }
 0x282   : > { %1492 = vsyncadd (!%p1257_p1), %s1175_s26, 4294956544  ;;  %p16_p3 = scmp.ge.s32.totalorder %s1561_s18, 4   ;;  %s2970_s12 = smov %s1499_s13 }
 0x283   : > { %s2971_s13 = smov %s1503_s14  ;;  %s2972_s14 = smov %s1573_s21 }
 0x284   : > { %s2973_s15 = smov %s1561_s18  ;;  %18 = sbr.rel (!%p16_p3) target bundleno = 5 (0x5), region = 79 }
 0x28b   :  { %1180 = vsyncpa [#allocation3], 1 }
 0x28c   :  { %1182 = vsyncpa [#allocation3 + $0x1], 1 }
 0x28d   :  { %1183 = vsyncpa [#allocation4], 1 }
 0x28e   :  { %1185 = vsyncpa [#allocation4 + $0x1], 1 }

</bundles_post_ra>
